<compile_context>
chip_gen: v6e
topology: v6e:2x2x1
jax: 0.10.0
libtpu: 0.0.40
codegen_flags: <defaults>
</compile_context>

<pallas_src>
import jax
import jax.numpy as jnp
from jax.experimental import pallas as pl
from jax.experimental.pallas import tpu as pltpu

KH = KW = 3          # conv kernel size
C_OUT = 2            # conv output channels
D1 = 9               # fc1 / fc2 width

# Offsets of each parameter inside the single packed (147,) f32 SMEM vector.
_CW, _CB = 0, 18         # conv weight (2,1,3,3) flat, conv bias (2,)
_W1, _B1 = 20, 38        # fc1 weight (9,2) flat, fc1 bias (9,)
_W2, _B2 = 47, 128       # fc2 weight (9,9) flat, fc2 bias (9,)
_W3, _B3 = 137, 146      # fc3 weight (1,9) flat, fc3 bias (1,)
_NW = 147


# ---------------------------------------------------------------------------
# Fused kernel: conv (both branches, both channels) -> view(-1,2) pairing
#               -> fc1 -> relu(fc2) -> relu(fc3) -> sigmoid(o1 * o2)
# ---------------------------------------------------------------------------
def _fused_siamese_kernel(xea_ref, xoa_ref, xeb_ref, xob_ref, w_ref, o_ref):
    # xea/xoa/xeb/xob: (2, B*C_OUT, H*K) f32 VMEM.  Lane (h*K + k) holds input
    #   column 2k+{0,1,2,3} of image row h; sublane rows are (batch, channel)
    #   pairs (image replicated across the channel sub-row); leading dim is
    #   the Siamese branch (0 = x1, 1 = x2).
    # w_ref : (147,) f32 SMEM -- all weights/biases packed flat.
    # o_ref : (B*C_OUT, Ho*K) f32 VMEM -- already PyTorch row order
    #   ((b*C + c)*Ho + h)*K + k, so the wrapper reshape(-1, 1) is metadata.
    _, R, Lin = xea_ref.shape
    _, Lc = o_ref.shape
    K = (Lin - Lc) // 2                 # pair-columns per image row

    # Channel id of each sub-row (row index = b*C_OUT + c).
    c_idx = jax.lax.broadcasted_iota(jnp.int32, (R, 1), 0) % C_OUT

    def wvec(i0, i1):
        # Per-sub-row conv scalar: channel-0 rows read w[i0], channel-1 w[i1].
        return jnp.where(c_idx == 0, w_ref[i0], w_ref[i1])

    def tap(ref, i):
        # Shifted conv window: value[..., h*K + k] = image[h + i, column];
        # a contiguous, lane-dense slice (no roll / strided load needed).
        return ref[:, :, pl.ds(i * K, Lc)]

    # ----- conv1 (1 -> 2 ch, 3x3, valid): produce the two .view(-1, 2)
    #       features f0 (even output column) / f1 (odd) for both channels. ----
    f0 = jnp.zeros((2, R, Lc), jnp.float32)
    f1 = jnp.zeros((2, R, Lc), jnp.float32)
    for i in range(KH):
        w0 = wvec(_CW + i * KW + 0, _CW + KH * KW + i * KW + 0)
        w1 = wvec(_CW + i * KW + 1, _CW + KH * KW + i * KW + 1)
        w2 = wvec(_CW + i * KW + 2, _CW + KH * KW + i * KW + 2)
        ea, oa = tap(xea_ref, i), tap(xoa_ref, i)
        eb, ob = tap(xeb_ref, i), tap(xob_ref, i)
        f0 = f0 + w0 * ea + w1 * oa + w2 * eb
        f1 = f1 + w0 * oa + w1 * eb + w2 * ob
    cb = wvec(_CB + 0, _CB + 1)
    f0 = f0 + cb
    f1 = f1 + cb

    # ----- fc1: Linear(2, 9), NO activation (matches the PyTorch module) -----
    h1 = [w_ref[_W1 + 2 * n] * f0 + w_ref[_W1 + 2 * n + 1] * f1
          + w_ref[_B1 + n] for n in range(D1)]

    # ----- relu(fc2) folded straight into the fc3 accumulation, relu(fc3) ----
    out = None
    for n in range(D1):
        t = w_ref[_W2 + D1 * n] * h1[0]
        for m in range(1, D1):
            t = t + w_ref[_W2 + D1 * n + m] * h1[m]
        t = jnp.maximum(t + w_ref[_B2 + n], 0.0)          # relu(fc2)[n]
        c = w_ref[_W3 + n] * t
        out = c if out is None else out + c
    out = jnp.maximum(out + w_ref[_B3], 0.0)              # relu(fc3): (2,R,Lc)

    # ----- Siamese combine + single lane-dense store in final row order -----
    o_ref[...] = jax.nn.sigmoid(out[0] * out[1])


# ---------------------------------------------------------------------------
# Wrapper
# ---------------------------------------------------------------------------
def pack_params(params):
    """Pack all weights/biases into one flat f32 vector (done once, pre-jit)."""
    f32 = jnp.float32
    parts = [params[k].reshape(-1).astype(f32)
             for k in ("conv_w", "conv_b", "fc1_w", "fc1_b",
                       "fc2_w", "fc2_b", "fc3_w", "fc3_b")]
    w = jnp.concatenate(parts)
    assert w.shape == (_NW,)
    return w


@jax.jit
def siamese_forward(wvec, x1, x2):
    B, cin, H, W = x1.shape
    assert cin == 1 and x2.shape == x1.shape
    Ho, Wo = H - KH + 1, W - KW + 1
    assert Wo % 2 == 0, "view(-1, 2) pairing here assumes an even conv width"
    K = Wo // 2
    R = B * C_OUT

    # The only non-metadata wrapper work: one small fusion selecting the four
    # shifted even/odd column sets the conv taps need, replicated over the
    # conv-channel sub-rows.  Everything else (weight packing, output order)
    # has been moved out of the per-call path.
    x = jnp.stack([x1[:, 0], x2[:, 0]], axis=0).astype(jnp.float32)  # (2,B,H,W)

    def prep(lo):
        a = x[:, :, :, lo:lo + 2 * K - 1:2]                  # (2, B, H, K)
        a = jnp.repeat(a[:, :, None], C_OUT, axis=2)         # (2, B, C, H, K)
        return a.reshape(2, R, H * K)                        # (2, R, H*K)

    xea, xoa, xeb, xob = prep(0), prep(1), prep(2), prep(3)

    vmem = pl.BlockSpec(memory_space=pltpu.MemorySpace.VMEM)
    smem = pl.BlockSpec(memory_space=pltpu.MemorySpace.SMEM)

    out = pl.pallas_call(
        _fused_siamese_kernel,
        out_shape=jax.ShapeDtypeStruct((R, Ho * K), jnp.float32),
        in_specs=[vmem, vmem, vmem, vmem, smem],
        out_specs=vmem,
    )(xea, xoa, xeb, xob, wvec)

    # (B*C_OUT, Ho*K) already flattens to PyTorch row order -> metadata only.
    return out.reshape(-1, 1)


# ---------------------------------------------------------------------------
# Pure-JAX reference (mirrors the PyTorch module) for a numerical check.
# ---------------------------------------------------------------------------
def _reference_forward(params, x1, x2):
    hp = jax.lax.Precision.HIGHEST

    def subnet(x):
        y = jax.lax.conv_general_dilated(
            x.astype(jnp.float32), params["conv_w"], (1, 1), "VALID",
            dimension_numbers=("NCHW", "OIHW", "NCHW"), precision=hp)
        y = y + params["conv_b"][None, :, None, None]
        f = y.reshape(-1, 2)                                   # == view(-1, 2)
        h = jnp.dot(f, params["fc1_w"].T, precision=hp) + params["fc1_b"]
        h = jnp.maximum(jnp.dot(h, params["fc2_w"].T, precision=hp)
                        + params["fc2_b"], 0.0)
        h = jnp.maximum(jnp.dot(h, params["fc3_w"].T, precision=hp)
                        + params["fc3_b"], 0.0)
        return h

    return jax.nn.sigmoid(subnet(x1) * subnet(x2))


# ---------------------------------------------------------------------------
# Deterministic parameter init (PyTorch-default-style uniform fan-in bounds).
# ---------------------------------------------------------------------------
def init_params(key):
    ks = jax.random.split(key, 8)

    def u(k, shape, fan_in):
        bound = 1.0 / (fan_in ** 0.5)
        return jax.random.uniform(k, shape, jnp.float32, -bound, bound)

    return {
        "conv_w": u(ks[0], (C_OUT, 1, KH, KW), KH * KW),
        "conv_b": u(ks[1], (C_OUT,), KH * KW),
        "fc1_w": u(ks[2], (9, 2), 2), "fc1_b": u(ks[3], (9,), 2),
        "fc2_w": u(ks[4], (9, 9), 9), "fc2_b": u(ks[5], (9,), 9),
        "fc3_w": u(ks[6], (1, 9), 9), "fc3_b": u(ks[7], (1,), 9),
    }


if __name__ == "__main__":
    key = jax.random.PRNGKey(0)
    kp, k1, k2 = jax.random.split(key, 3)
    params = init_params(kp)
    wvec = pack_params(params)                     # packed once, outside jit

    B, H, W = 2, 16, 16
    x1 = jax.random.normal(k1, (B, 1, H, W), jnp.float32)
    x2 = jax.random.normal(k2, (B, 1, H, W), jnp.float32)

    out = siamese_forward(wvec, x1, x2)            # (B*2*14*7, 1) = (392, 1)
    jax.block_until_ready(out)

    assert out.shape == (B * C_OUT * (H - 2) * ((W - 2) // 2), 1), out.shape
    assert bool(jnp.all((out >= 0.0) & (out <= 1.0)))

    ref = _reference_forward(params, x1, x2)
    max_err = float(jnp.max(jnp.abs(out - ref)))
    assert max_err < 1e-4, f"mismatch vs reference: max abs err = {max_err}"

    print("KERNEL_OK")
</pallas_src>

<mosaic_0001>
module attributes {stable_mosaic.version = 11 : i64} {
  func.func @_fused_siamese_kernel(%arg0: memref<2x4x112xf32, #tpu.memory_space<vmem>>, %arg1: memref<2x4x112xf32, #tpu.memory_space<vmem>>, %arg2: memref<2x4x112xf32, #tpu.memory_space<vmem>>, %arg3: memref<2x4x112xf32, #tpu.memory_space<vmem>>, %arg4: memref<147xf32, #tpu.memory_space<smem>>, %arg5: memref<4x98xf32, #tpu.memory_space<vmem>>) attributes {dimension_semantics = [], scalar_prefetch = 0 : i64, scratch_operands = 0 : i64, tpu.core_type = #tpu.core_type<tc>} {
    %0 = tpu.iota {dimensions = array<i32: 0>} : vector<4x1xi32>
    %c2_i32 = arith.constant 2 : i32
    %c0_i32 = arith.constant 0 : i32
    %1 = arith.cmpi eq, %c2_i32, %c0_i32 : i32
    %c1_i32 = arith.constant 1 : i32
    %2 = arith.select %1, %c1_i32, %c2_i32 : i32
    %3 = vector.broadcast %2 : i32 to vector<4x1xi32>
    %4 = arith.remsi %0, %3 : vector<4x1xi32>
    %c0_i32_0 = arith.constant 0 : i32
    %5 = vector.broadcast %c0_i32_0 : i32 to vector<4x1xi32>
    %6 = arith.cmpi ne, %4, %5 : vector<4x1xi32>
    %c0_i32_1 = arith.constant 0 : i32
    %7 = vector.broadcast %c0_i32_1 : i32 to vector<4x1xi32>
    %8 = arith.cmpi slt, %4, %7 : vector<4x1xi32>
    %c0_i32_2 = arith.constant 0 : i32
    %9 = arith.cmpi slt, %2, %c0_i32_2 : i32
    %10 = vector.broadcast %9 : i1 to vector<4x1xi1>
    %11 = vector.broadcast %10 : vector<4x1xi1> to vector<4x1xi1>
    %12 = arith.xori %8, %11 : vector<4x1xi1>
    %13 = arith.andi %12, %6 : vector<4x1xi1>
    %14 = vector.broadcast %2 : i32 to vector<4x1xi32>
    %15 = arith.addi %4, %14 : vector<4x1xi32>
    %16 = arith.select %13, %15, %4 : vector<4x1xi1>, vector<4x1xi32>
    %cst = arith.constant 0.000000e+00 : f32
    %17 = vector.broadcast %cst : f32 to vector<2x4x98xf32>
    %cst_3 = arith.constant 0.000000e+00 : f32
    %18 = vector.broadcast %cst_3 : f32 to vector<2x4x98xf32>
    %c0_i32_4 = arith.constant 0 : i32
    %19 = vector.broadcast %c0_i32_4 : i32 to vector<4x1xi32>
    %20 = arith.cmpi eq, %16, %19 : vector<4x1xi32>
    %c0 = arith.constant 0 : index
    %21 = memref.load %arg4[%c0] : memref<147xf32, #tpu.memory_space<smem>>
    %c9 = arith.constant 9 : index
    %22 = memref.load %arg4[%c9] : memref<147xf32, #tpu.memory_space<smem>>
    %23 = vector.broadcast %21 : f32 to vector<4x1xf32>
    %24 = vector.broadcast %22 : f32 to vector<4x1xf32>
    %25 = arith.select %20, %23, %24 : vector<4x1xi1>, vector<4x1xf32>
    %c0_i32_5 = arith.constant 0 : i32
    %26 = vector.broadcast %c0_i32_5 : i32 to vector<4x1xi32>
    %27 = arith.cmpi eq, %16, %26 : vector<4x1xi32>
    %c1 = arith.constant 1 : index
    %28 = memref.load %arg4[%c1] : memref<147xf32, #tpu.memory_space<smem>>
    %c10 = arith.constant 10 : index
    %29 = memref.load %arg4[%c10] : memref<147xf32, #tpu.memory_space<smem>>
    %30 = vector.broadcast %28 : f32 to vector<4x1xf32>
    %31 = vector.broadcast %29 : f32 to vector<4x1xf32>
    %32 = arith.select %27, %30, %31 : vector<4x1xi1>, vector<4x1xf32>
    %c0_i32_6 = arith.constant 0 : i32
    %33 = vector.broadcast %c0_i32_6 : i32 to vector<4x1xi32>
    %34 = arith.cmpi eq, %16, %33 : vector<4x1xi32>
    %c2 = arith.constant 2 : index
    %35 = memref.load %arg4[%c2] : memref<147xf32, #tpu.memory_space<smem>>
    %c11 = arith.constant 11 : index
    %36 = memref.load %arg4[%c11] : memref<147xf32, #tpu.memory_space<smem>>
    %37 = vector.broadcast %35 : f32 to vector<4x1xf32>
    %38 = vector.broadcast %36 : f32 to vector<4x1xf32>
    %39 = arith.select %34, %37, %38 : vector<4x1xi1>, vector<4x1xf32>
    %c0_7 = arith.constant 0 : index
    %c0_8 = arith.constant 0 : index
    %c0_9 = arith.constant 0 : index
    %40 = vector.load %arg0[%c0_7, %c0_8, %c0_9] : memref<2x4x112xf32, #tpu.memory_space<vmem>>, vector<2x4x98xf32>
    %c0_10 = arith.constant 0 : index
    %c0_11 = arith.constant 0 : index
    %c0_12 = arith.constant 0 : index
    %41 = vector.load %arg1[%c0_10, %c0_11, %c0_12] : memref<2x4x112xf32, #tpu.memory_space<vmem>>, vector<2x4x98xf32>
    %c0_13 = arith.constant 0 : index
    %c0_14 = arith.constant 0 : index
    %c0_15 = arith.constant 0 : index
    %42 = vector.load %arg2[%c0_13, %c0_14, %c0_15] : memref<2x4x112xf32, #tpu.memory_space<vmem>>, vector<2x4x98xf32>
    %c0_16 = arith.constant 0 : index
    %c0_17 = arith.constant 0 : index
    %c0_18 = arith.constant 0 : index
    %43 = vector.load %arg3[%c0_16, %c0_17, %c0_18] : memref<2x4x112xf32, #tpu.memory_space<vmem>>, vector<2x4x98xf32>
    %44 = vector.shape_cast %25 : vector<4x1xf32> to vector<1x4x1xf32>
    %45 = vector.broadcast %44 : vector<1x4x1xf32> to vector<2x4x98xf32>
    %46 = arith.mulf %45, %40 : vector<2x4x98xf32>
    %47 = arith.addf %17, %46 : vector<2x4x98xf32>
    %48 = vector.shape_cast %32 : vector<4x1xf32> to vector<1x4x1xf32>
    %49 = vector.broadcast %48 : vector<1x4x1xf32> to vector<2x4x98xf32>
    %50 = arith.mulf %49, %41 : vector<2x4x98xf32>
    %51 = arith.addf %47, %50 : vector<2x4x98xf32>
    %52 = vector.shape_cast %39 : vector<4x1xf32> to vector<1x4x1xf32>
    %53 = vector.broadcast %52 : vector<1x4x1xf32> to vector<2x4x98xf32>
    %54 = arith.mulf %53, %42 : vector<2x4x98xf32>
    %55 = arith.addf %51, %54 : vector<2x4x98xf32>
    %56 = vector.shape_cast %25 : vector<4x1xf32> to vector<1x4x1xf32>
    %57 = vector.broadcast %56 : vector<1x4x1xf32> to vector<2x4x98xf32>
    %58 = arith.mulf %57, %41 : vector<2x4x98xf32>
    %59 = arith.addf %18, %58 : vector<2x4x98xf32>
    %60 = vector.shape_cast %32 : vector<4x1xf32> to vector<1x4x1xf32>
    %61 = vector.broadcast %60 : vector<1x4x1xf32> to vector<2x4x98xf32>
    %62 = arith.mulf %61, %42 : vector<2x4x98xf32>
    %63 = arith.addf %59, %62 : vector<2x4x98xf32>
    %64 = vector.shape_cast %39 : vector<4x1xf32> to vector<1x4x1xf32>
    %65 = vector.broadcast %64 : vector<1x4x1xf32> to vector<2x4x98xf32>
    %66 = arith.mulf %65, %43 : vector<2x4x98xf32>
    %67 = arith.addf %63, %66 : vector<2x4x98xf32>
    %c0_i32_19 = arith.constant 0 : i32
    %68 = vector.broadcast %c0_i32_19 : i32 to vector<4x1xi32>
    %69 = arith.cmpi eq, %16, %68 : vector<4x1xi32>
    %c3 = arith.constant 3 : index
    %70 = memref.load %arg4[%c3] : memref<147xf32, #tpu.memory_space<smem>>
    %c12 = arith.constant 12 : index
    %71 = memref.load %arg4[%c12] : memref<147xf32, #tpu.memory_space<smem>>
    %72 = vector.broadcast %70 : f32 to vector<4x1xf32>
    %73 = vector.broadcast %71 : f32 to vector<4x1xf32>
    %74 = arith.select %69, %72, %73 : vector<4x1xi1>, vector<4x1xf32>
    %c0_i32_20 = arith.constant 0 : i32
    %75 = vector.broadcast %c0_i32_20 : i32 to vector<4x1xi32>
    %76 = arith.cmpi eq, %16, %75 : vector<4x1xi32>
    %c4 = arith.constant 4 : index
    %77 = memref.load %arg4[%c4] : memref<147xf32, #tpu.memory_space<smem>>
    %c13 = arith.constant 13 : index
    %78 = memref.load %arg4[%c13] : memref<147xf32, #tpu.memory_space<smem>>
    %79 = vector.broadcast %77 : f32 to vector<4x1xf32>
    %80 = vector.broadcast %78 : f32 to vector<4x1xf32>
    %81 = arith.select %76, %79, %80 : vector<4x1xi1>, vector<4x1xf32>
    %c0_i32_21 = arith.constant 0 : i32
    %82 = vector.broadcast %c0_i32_21 : i32 to vector<4x1xi32>
    %83 = arith.cmpi eq, %16, %82 : vector<4x1xi32>
    %c5 = arith.constant 5 : index
    %84 = memref.load %arg4[%c5] : memref<147xf32, #tpu.memory_space<smem>>
    %c14 = arith.constant 14 : index
    %85 = memref.load %arg4[%c14] : memref<147xf32, #tpu.memory_space<smem>>
    %86 = vector.broadcast %84 : f32 to vector<4x1xf32>
    %87 = vector.broadcast %85 : f32 to vector<4x1xf32>
    %88 = arith.select %83, %86, %87 : vector<4x1xi1>, vector<4x1xf32>
    %c0_22 = arith.constant 0 : index
    %c0_23 = arith.constant 0 : index
    %c7 = arith.constant 7 : index
    %89 = vector.load %arg0[%c0_22, %c0_23, %c7] : memref<2x4x112xf32, #tpu.memory_space<vmem>>, vector<2x4x98xf32>
    %c0_24 = arith.constant 0 : index
    %c0_25 = arith.constant 0 : index
    %c7_26 = arith.constant 7 : index
    %90 = vector.load %arg1[%c0_24, %c0_25, %c7_26] : memref<2x4x112xf32, #tpu.memory_space<vmem>>, vector<2x4x98xf32>
    %c0_27 = arith.constant 0 : index
    %c0_28 = arith.constant 0 : index
    %c7_29 = arith.constant 7 : index
    %91 = vector.load %arg2[%c0_27, %c0_28, %c7_29] : memref<2x4x112xf32, #tpu.memory_space<vmem>>, vector<2x4x98xf32>
    %c0_30 = arith.constant 0 : index
    %c0_31 = arith.constant 0 : index
    %c7_32 = arith.constant 7 : index
    %92 = vector.load %arg3[%c0_30, %c0_31, %c7_32] : memref<2x4x112xf32, #tpu.memory_space<vmem>>, vector<2x4x98xf32>
    %93 = vector.shape_cast %74 : vector<4x1xf32> to vector<1x4x1xf32>
    %94 = vector.broadcast %93 : vector<1x4x1xf32> to vector<2x4x98xf32>
    %95 = arith.mulf %94, %89 : vector<2x4x98xf32>
    %96 = arith.addf %55, %95 : vector<2x4x98xf32>
    %97 = vector.shape_cast %81 : vector<4x1xf32> to vector<1x4x1xf32>
    %98 = vector.broadcast %97 : vector<1x4x1xf32> to vector<2x4x98xf32>
    %99 = arith.mulf %98, %90 : vector<2x4x98xf32>
    %100 = arith.addf %96, %99 : vector<2x4x98xf32>
    %101 = vector.shape_cast %88 : vector<4x1xf32> to vector<1x4x1xf32>
    %102 = vector.broadcast %101 : vector<1x4x1xf32> to vector<2x4x98xf32>
    %103 = arith.mulf %102, %91 : vector<2x4x98xf32>
    %104 = arith.addf %100, %103 : vector<2x4x98xf32>
    %105 = vector.shape_cast %74 : vector<4x1xf32> to vector<1x4x1xf32>
    %106 = vector.broadcast %105 : vector<1x4x1xf32> to vector<2x4x98xf32>
    %107 = arith.mulf %106, %90 : vector<2x4x98xf32>
    %108 = arith.addf %67, %107 : vector<2x4x98xf32>
    %109 = vector.shape_cast %81 : vector<4x1xf32> to vector<1x4x1xf32>
    %110 = vector.broadcast %109 : vector<1x4x1xf32> to vector<2x4x98xf32>
    %111 = arith.mulf %110, %91 : vector<2x4x98xf32>
    %112 = arith.addf %108, %111 : vector<2x4x98xf32>
    %113 = vector.shape_cast %88 : vector<4x1xf32> to vector<1x4x1xf32>
    %114 = vector.broadcast %113 : vector<1x4x1xf32> to vector<2x4x98xf32>
    %115 = arith.mulf %114, %92 : vector<2x4x98xf32>
    %116 = arith.addf %112, %115 : vector<2x4x98xf32>
    %c0_i32_33 = arith.constant 0 : i32
    %117 = vector.broadcast %c0_i32_33 : i32 to vector<4x1xi32>
    %118 = arith.cmpi eq, %16, %117 : vector<4x1xi32>
    %c6 = arith.constant 6 : index
    %119 = memref.load %arg4[%c6] : memref<147xf32, #tpu.memory_space<smem>>
    %c15 = arith.constant 15 : index
    %120 = memref.load %arg4[%c15] : memref<147xf32, #tpu.memory_space<smem>>
    %121 = vector.broadcast %119 : f32 to vector<4x1xf32>
    %122 = vector.broadcast %120 : f32 to vector<4x1xf32>
    %123 = arith.select %118, %121, %122 : vector<4x1xi1>, vector<4x1xf32>
    %c0_i32_34 = arith.constant 0 : i32
    %124 = vector.broadcast %c0_i32_34 : i32 to vector<4x1xi32>
    %125 = arith.cmpi eq, %16, %124 : vector<4x1xi32>
    %c7_35 = arith.constant 7 : index
    %126 = memref.load %arg4[%c7_35] : memref<147xf32, #tpu.memory_space<smem>>
    %c16 = arith.constant 16 : index
    %127 = memref.load %arg4[%c16] : memref<147xf32, #tpu.memory_space<smem>>
    %128 = vector.broadcast %126 : f32 to vector<4x1xf32>
    %129 = vector.broadcast %127 : f32 to vector<4x1xf32>
    %130 = arith.select %125, %128, %129 : vector<4x1xi1>, vector<4x1xf32>
    %c0_i32_36 = arith.constant 0 : i32
    %131 = vector.broadcast %c0_i32_36 : i32 to vector<4x1xi32>
    %132 = arith.cmpi eq, %16, %131 : vector<4x1xi32>
    %c8 = arith.constant 8 : index
    %133 = memref.load %arg4[%c8] : memref<147xf32, #tpu.memory_space<smem>>
    %c17 = arith.constant 17 : index
    %134 = memref.load %arg4[%c17] : memref<147xf32, #tpu.memory_space<smem>>
    %135 = vector.broadcast %133 : f32 to vector<4x1xf32>
    %136 = vector.broadcast %134 : f32 to vector<4x1xf32>
    %137 = arith.select %132, %135, %136 : vector<4x1xi1>, vector<4x1xf32>
    %c0_37 = arith.constant 0 : index
    %c0_38 = arith.constant 0 : index
    %c14_39 = arith.constant 14 : index
    %138 = vector.load %arg0[%c0_37, %c0_38, %c14_39] : memref<2x4x112xf32, #tpu.memory_space<vmem>>, vector<2x4x98xf32>
    %c0_40 = arith.constant 0 : index
    %c0_41 = arith.constant 0 : index
    %c14_42 = arith.constant 14 : index
    %139 = vector.load %arg1[%c0_40, %c0_41, %c14_42] : memref<2x4x112xf32, #tpu.memory_space<vmem>>, vector<2x4x98xf32>
    %c0_43 = arith.constant 0 : index
    %c0_44 = arith.constant 0 : index
    %c14_45 = arith.constant 14 : index
    %140 = vector.load %arg2[%c0_43, %c0_44, %c14_45] : memref<2x4x112xf32, #tpu.memory_space<vmem>>, vector<2x4x98xf32>
    %c0_46 = arith.constant 0 : index
    %c0_47 = arith.constant 0 : index
    %c14_48 = arith.constant 14 : index
    %141 = vector.load %arg3[%c0_46, %c0_47, %c14_48] : memref<2x4x112xf32, #tpu.memory_space<vmem>>, vector<2x4x98xf32>
    %142 = vector.shape_cast %123 : vector<4x1xf32> to vector<1x4x1xf32>
    %143 = vector.broadcast %142 : vector<1x4x1xf32> to vector<2x4x98xf32>
    %144 = arith.mulf %143, %138 : vector<2x4x98xf32>
    %145 = arith.addf %104, %144 : vector<2x4x98xf32>
    %146 = vector.shape_cast %130 : vector<4x1xf32> to vector<1x4x1xf32>
    %147 = vector.broadcast %146 : vector<1x4x1xf32> to vector<2x4x98xf32>
    %148 = arith.mulf %147, %139 : vector<2x4x98xf32>
    %149 = arith.addf %145, %148 : vector<2x4x98xf32>
    %150 = vector.shape_cast %137 : vector<4x1xf32> to vector<1x4x1xf32>
    %151 = vector.broadcast %150 : vector<1x4x1xf32> to vector<2x4x98xf32>
    %152 = arith.mulf %151, %140 : vector<2x4x98xf32>
    %153 = arith.addf %149, %152 : vector<2x4x98xf32>
    %154 = vector.shape_cast %123 : vector<4x1xf32> to vector<1x4x1xf32>
    %155 = vector.broadcast %154 : vector<1x4x1xf32> to vector<2x4x98xf32>
    %156 = arith.mulf %155, %139 : vector<2x4x98xf32>
    %157 = arith.addf %116, %156 : vector<2x4x98xf32>
    %158 = vector.shape_cast %130 : vector<4x1xf32> to vector<1x4x1xf32>
    %159 = vector.broadcast %158 : vector<1x4x1xf32> to vector<2x4x98xf32>
    %160 = arith.mulf %159, %140 : vector<2x4x98xf32>
    %161 = arith.addf %157, %160 : vector<2x4x98xf32>
    %162 = vector.shape_cast %137 : vector<4x1xf32> to vector<1x4x1xf32>
    %163 = vector.broadcast %162 : vector<1x4x1xf32> to vector<2x4x98xf32>
    %164 = arith.mulf %163, %141 : vector<2x4x98xf32>
    %165 = arith.addf %161, %164 : vector<2x4x98xf32>
    %c0_i32_49 = arith.constant 0 : i32
    %166 = vector.broadcast %c0_i32_49 : i32 to vector<4x1xi32>
    %167 = arith.cmpi eq, %16, %166 : vector<4x1xi32>
    %c18 = arith.constant 18 : index
    %168 = memref.load %arg4[%c18] : memref<147xf32, #tpu.memory_space<smem>>
    %c19 = arith.constant 19 : index
    %169 = memref.load %arg4[%c19] : memref<147xf32, #tpu.memory_space<smem>>
    %170 = vector.broadcast %168 : f32 to vector<4x1xf32>
    %171 = vector.broadcast %169 : f32 to vector<4x1xf32>
    %172 = arith.select %167, %170, %171 : vector<4x1xi1>, vector<4x1xf32>
    %173 = vector.shape_cast %172 : vector<4x1xf32> to vector<1x4x1xf32>
    %174 = vector.broadcast %173 : vector<1x4x1xf32> to vector<2x4x98xf32>
    %175 = arith.addf %153, %174 : vector<2x4x98xf32>
    %176 = vector.shape_cast %172 : vector<4x1xf32> to vector<1x4x1xf32>
    %177 = vector.broadcast %176 : vector<1x4x1xf32> to vector<2x4x98xf32>
    %178 = arith.addf %165, %177 : vector<2x4x98xf32>
    %c20 = arith.constant 20 : index
    %179 = memref.load %arg4[%c20] : memref<147xf32, #tpu.memory_space<smem>>
    %180 = vector.broadcast %179 : f32 to vector<2x4x98xf32>
    %181 = arith.mulf %180, %175 : vector<2x4x98xf32>
    %c21 = arith.constant 21 : index
    %182 = memref.load %arg4[%c21] : memref<147xf32, #tpu.memory_space<smem>>
    %183 = vector.broadcast %182 : f32 to vector<2x4x98xf32>
    %184 = arith.mulf %183, %178 : vector<2x4x98xf32>
    %185 = arith.addf %181, %184 : vector<2x4x98xf32>
    %c38 = arith.constant 38 : index
    %186 = memref.load %arg4[%c38] : memref<147xf32, #tpu.memory_space<smem>>
    %187 = vector.broadcast %186 : f32 to vector<2x4x98xf32>
    %188 = arith.addf %185, %187 : vector<2x4x98xf32>
    %c22 = arith.constant 22 : index
    %189 = memref.load %arg4[%c22] : memref<147xf32, #tpu.memory_space<smem>>
    %190 = vector.broadcast %189 : f32 to vector<2x4x98xf32>
    %191 = arith.mulf %190, %175 : vector<2x4x98xf32>
    %c23 = arith.constant 23 : index
    %192 = memref.load %arg4[%c23] : memref<147xf32, #tpu.memory_space<smem>>
    %193 = vector.broadcast %192 : f32 to vector<2x4x98xf32>
    %194 = arith.mulf %193, %178 : vector<2x4x98xf32>
    %195 = arith.addf %191, %194 : vector<2x4x98xf32>
    %c39 = arith.constant 39 : index
    %196 = memref.load %arg4[%c39] : memref<147xf32, #tpu.memory_space<smem>>
    %197 = vector.broadcast %196 : f32 to vector<2x4x98xf32>
    %198 = arith.addf %195, %197 : vector<2x4x98xf32>
    %c24 = arith.constant 24 : index
    %199 = memref.load %arg4[%c24] : memref<147xf32, #tpu.memory_space<smem>>
    %200 = vector.broadcast %199 : f32 to vector<2x4x98xf32>
    %201 = arith.mulf %200, %175 : vector<2x4x98xf32>
    %c25 = arith.constant 25 : index
    %202 = memref.load %arg4[%c25] : memref<147xf32, #tpu.memory_space<smem>>
    %203 = vector.broadcast %202 : f32 to vector<2x4x98xf32>
    %204 = arith.mulf %203, %178 : vector<2x4x98xf32>
    %205 = arith.addf %201, %204 : vector<2x4x98xf32>
    %c40 = arith.constant 40 : index
    %206 = memref.load %arg4[%c40] : memref<147xf32, #tpu.memory_space<smem>>
    %207 = vector.broadcast %206 : f32 to vector<2x4x98xf32>
    %208 = arith.addf %205, %207 : vector<2x4x98xf32>
    %c26 = arith.constant 26 : index
    %209 = memref.load %arg4[%c26] : memref<147xf32, #tpu.memory_space<smem>>
    %210 = vector.broadcast %209 : f32 to vector<2x4x98xf32>
    %211 = arith.mulf %210, %175 : vector<2x4x98xf32>
    %c27 = arith.constant 27 : index
    %212 = memref.load %arg4[%c27] : memref<147xf32, #tpu.memory_space<smem>>
    %213 = vector.broadcast %212 : f32 to vector<2x4x98xf32>
    %214 = arith.mulf %213, %178 : vector<2x4x98xf32>
    %215 = arith.addf %211, %214 : vector<2x4x98xf32>
    %c41 = arith.constant 41 : index
    %216 = memref.load %arg4[%c41] : memref<147xf32, #tpu.memory_space<smem>>
    %217 = vector.broadcast %216 : f32 to vector<2x4x98xf32>
    %218 = arith.addf %215, %217 : vector<2x4x98xf32>
    %c28 = arith.constant 28 : index
    %219 = memref.load %arg4[%c28] : memref<147xf32, #tpu.memory_space<smem>>
    %220 = vector.broadcast %219 : f32 to vector<2x4x98xf32>
    %221 = arith.mulf %220, %175 : vector<2x4x98xf32>
    %c29 = arith.constant 29 : index
    %222 = memref.load %arg4[%c29] : memref<147xf32, #tpu.memory_space<smem>>
    %223 = vector.broadcast %222 : f32 to vector<2x4x98xf32>
    %224 = arith.mulf %223, %178 : vector<2x4x98xf32>
    %225 = arith.addf %221, %224 : vector<2x4x98xf32>
    %c42 = arith.constant 42 : index
    %226 = memref.load %arg4[%c42] : memref<147xf32, #tpu.memory_space<smem>>
    %227 = vector.broadcast %226 : f32 to vector<2x4x98xf32>
    %228 = arith.addf %225, %227 : vector<2x4x98xf32>
    %c30 = arith.constant 30 : index
    %229 = memref.load %arg4[%c30] : memref<147xf32, #tpu.memory_space<smem>>
    %230 = vector.broadcast %229 : f32 to vector<2x4x98xf32>
    %231 = arith.mulf %230, %175 : vector<2x4x98xf32>
    %c31 = arith.constant 31 : index
    %232 = memref.load %arg4[%c31] : memref<147xf32, #tpu.memory_space<smem>>
    %233 = vector.broadcast %232 : f32 to vector<2x4x98xf32>
    %234 = arith.mulf %233, %178 : vector<2x4x98xf32>
    %235 = arith.addf %231, %234 : vector<2x4x98xf32>
    %c43 = arith.constant 43 : index
    %236 = memref.load %arg4[%c43] : memref<147xf32, #tpu.memory_space<smem>>
    %237 = vector.broadcast %236 : f32 to vector<2x4x98xf32>
    %238 = arith.addf %235, %237 : vector<2x4x98xf32>
    %c32 = arith.constant 32 : index
    %239 = memref.load %arg4[%c32] : memref<147xf32, #tpu.memory_space<smem>>
    %240 = vector.broadcast %239 : f32 to vector<2x4x98xf32>
    %241 = arith.mulf %240, %175 : vector<2x4x98xf32>
    %c33 = arith.constant 33 : index
    %242 = memref.load %arg4[%c33] : memref<147xf32, #tpu.memory_space<smem>>
    %243 = vector.broadcast %242 : f32 to vector<2x4x98xf32>
    %244 = arith.mulf %243, %178 : vector<2x4x98xf32>
    %245 = arith.addf %241, %244 : vector<2x4x98xf32>
    %c44 = arith.constant 44 : index
    %246 = memref.load %arg4[%c44] : memref<147xf32, #tpu.memory_space<smem>>
    %247 = vector.broadcast %246 : f32 to vector<2x4x98xf32>
    %248 = arith.addf %245, %247 : vector<2x4x98xf32>
    %c34 = arith.constant 34 : index
    %249 = memref.load %arg4[%c34] : memref<147xf32, #tpu.memory_space<smem>>
    %250 = vector.broadcast %249 : f32 to vector<2x4x98xf32>
    %251 = arith.mulf %250, %175 : vector<2x4x98xf32>
    %c35 = arith.constant 35 : index
    %252 = memref.load %arg4[%c35] : memref<147xf32, #tpu.memory_space<smem>>
    %253 = vector.broadcast %252 : f32 to vector<2x4x98xf32>
    %254 = arith.mulf %253, %178 : vector<2x4x98xf32>
    %255 = arith.addf %251, %254 : vector<2x4x98xf32>
    %c45 = arith.constant 45 : index
    %256 = memref.load %arg4[%c45] : memref<147xf32, #tpu.memory_space<smem>>
    %257 = vector.broadcast %256 : f32 to vector<2x4x98xf32>
    %258 = arith.addf %255, %257 : vector<2x4x98xf32>
    %c36 = arith.constant 36 : index
    %259 = memref.load %arg4[%c36] : memref<147xf32, #tpu.memory_space<smem>>
    %260 = vector.broadcast %259 : f32 to vector<2x4x98xf32>
    %261 = arith.mulf %260, %175 : vector<2x4x98xf32>
    %c37 = arith.constant 37 : index
    %262 = memref.load %arg4[%c37] : memref<147xf32, #tpu.memory_space<smem>>
    %263 = vector.broadcast %262 : f32 to vector<2x4x98xf32>
    %264 = arith.mulf %263, %178 : vector<2x4x98xf32>
    %265 = arith.addf %261, %264 : vector<2x4x98xf32>
    %c46 = arith.constant 46 : index
    %266 = memref.load %arg4[%c46] : memref<147xf32, #tpu.memory_space<smem>>
    %267 = vector.broadcast %266 : f32 to vector<2x4x98xf32>
    %268 = arith.addf %265, %267 : vector<2x4x98xf32>
    %c47 = arith.constant 47 : index
    %269 = memref.load %arg4[%c47] : memref<147xf32, #tpu.memory_space<smem>>
    %270 = vector.broadcast %269 : f32 to vector<2x4x98xf32>
    %271 = arith.mulf %270, %188 : vector<2x4x98xf32>
    %c48 = arith.constant 48 : index
    %272 = memref.load %arg4[%c48] : memref<147xf32, #tpu.memory_space<smem>>
    %273 = vector.broadcast %272 : f32 to vector<2x4x98xf32>
    %274 = arith.mulf %273, %198 : vector<2x4x98xf32>
    %275 = arith.addf %271, %274 : vector<2x4x98xf32>
    %c49 = arith.constant 49 : index
    %276 = memref.load %arg4[%c49] : memref<147xf32, #tpu.memory_space<smem>>
    %277 = vector.broadcast %276 : f32 to vector<2x4x98xf32>
    %278 = arith.mulf %277, %208 : vector<2x4x98xf32>
    %279 = arith.addf %275, %278 : vector<2x4x98xf32>
    %c50 = arith.constant 50 : index
    %280 = memref.load %arg4[%c50] : memref<147xf32, #tpu.memory_space<smem>>
    %281 = vector.broadcast %280 : f32 to vector<2x4x98xf32>
    %282 = arith.mulf %281, %218 : vector<2x4x98xf32>
    %283 = arith.addf %279, %282 : vector<2x4x98xf32>
    %c51 = arith.constant 51 : index
    %284 = memref.load %arg4[%c51] : memref<147xf32, #tpu.memory_space<smem>>
    %285 = vector.broadcast %284 : f32 to vector<2x4x98xf32>
    %286 = arith.mulf %285, %228 : vector<2x4x98xf32>
    %287 = arith.addf %283, %286 : vector<2x4x98xf32>
    %c52 = arith.constant 52 : index
    %288 = memref.load %arg4[%c52] : memref<147xf32, #tpu.memory_space<smem>>
    %289 = vector.broadcast %288 : f32 to vector<2x4x98xf32>
    %290 = arith.mulf %289, %238 : vector<2x4x98xf32>
    %291 = arith.addf %287, %290 : vector<2x4x98xf32>
    %c53 = arith.constant 53 : index
    %292 = memref.load %arg4[%c53] : memref<147xf32, #tpu.memory_space<smem>>
    %293 = vector.broadcast %292 : f32 to vector<2x4x98xf32>
    %294 = arith.mulf %293, %248 : vector<2x4x98xf32>
    %295 = arith.addf %291, %294 : vector<2x4x98xf32>
    %c54 = arith.constant 54 : index
    %296 = memref.load %arg4[%c54] : memref<147xf32, #tpu.memory_space<smem>>
    %297 = vector.broadcast %296 : f32 to vector<2x4x98xf32>
    %298 = arith.mulf %297, %258 : vector<2x4x98xf32>
    %299 = arith.addf %295, %298 : vector<2x4x98xf32>
    %c55 = arith.constant 55 : index
    %300 = memref.load %arg4[%c55] : memref<147xf32, #tpu.memory_space<smem>>
    %301 = vector.broadcast %300 : f32 to vector<2x4x98xf32>
    %302 = arith.mulf %301, %268 : vector<2x4x98xf32>
    %303 = arith.addf %299, %302 : vector<2x4x98xf32>
    %c128 = arith.constant 128 : index
    %304 = memref.load %arg4[%c128] : memref<147xf32, #tpu.memory_space<smem>>
    %305 = vector.broadcast %304 : f32 to vector<2x4x98xf32>
    %306 = arith.addf %303, %305 : vector<2x4x98xf32>
    %cst_50 = arith.constant 0.000000e+00 : f32
    %307 = vector.broadcast %cst_50 : f32 to vector<2x4x98xf32>
    %308 = arith.maximumf %306, %307 : vector<2x4x98xf32>
    %c137 = arith.constant 137 : index
    %309 = memref.load %arg4[%c137] : memref<147xf32, #tpu.memory_space<smem>>
    %310 = vector.broadcast %309 : f32 to vector<2x4x98xf32>
    %311 = arith.mulf %310, %308 : vector<2x4x98xf32>
    %c56 = arith.constant 56 : index
    %312 = memref.load %arg4[%c56] : memref<147xf32, #tpu.memory_space<smem>>
    %313 = vector.broadcast %312 : f32 to vector<2x4x98xf32>
    %314 = arith.mulf %313, %188 : vector<2x4x98xf32>
    %c57 = arith.constant 57 : index
    %315 = memref.load %arg4[%c57] : memref<147xf32, #tpu.memory_space<smem>>
    %316 = vector.broadcast %315 : f32 to vector<2x4x98xf32>
    %317 = arith.mulf %316, %198 : vector<2x4x98xf32>
    %318 = arith.addf %314, %317 : vector<2x4x98xf32>
    %c58 = arith.constant 58 : index
    %319 = memref.load %arg4[%c58] : memref<147xf32, #tpu.memory_space<smem>>
    %320 = vector.broadcast %319 : f32 to vector<2x4x98xf32>
    %321 = arith.mulf %320, %208 : vector<2x4x98xf32>
    %322 = arith.addf %318, %321 : vector<2x4x98xf32>
    %c59 = arith.constant 59 : index
    %323 = memref.load %arg4[%c59] : memref<147xf32, #tpu.memory_space<smem>>
    %324 = vector.broadcast %323 : f32 to vector<2x4x98xf32>
    %325 = arith.mulf %324, %218 : vector<2x4x98xf32>
    %326 = arith.addf %322, %325 : vector<2x4x98xf32>
    %c60 = arith.constant 60 : index
    %327 = memref.load %arg4[%c60] : memref<147xf32, #tpu.memory_space<smem>>
    %328 = vector.broadcast %327 : f32 to vector<2x4x98xf32>
    %329 = arith.mulf %328, %228 : vector<2x4x98xf32>
    %330 = arith.addf %326, %329 : vector<2x4x98xf32>
    %c61 = arith.constant 61 : index
    %331 = memref.load %arg4[%c61] : memref<147xf32, #tpu.memory_space<smem>>
    %332 = vector.broadcast %331 : f32 to vector<2x4x98xf32>
    %333 = arith.mulf %332, %238 : vector<2x4x98xf32>
    %334 = arith.addf %330, %333 : vector<2x4x98xf32>
    %c62 = arith.constant 62 : index
    %335 = memref.load %arg4[%c62] : memref<147xf32, #tpu.memory_space<smem>>
    %336 = vector.broadcast %335 : f32 to vector<2x4x98xf32>
    %337 = arith.mulf %336, %248 : vector<2x4x98xf32>
    %338 = arith.addf %334, %337 : vector<2x4x98xf32>
    %c63 = arith.constant 63 : index
    %339 = memref.load %arg4[%c63] : memref<147xf32, #tpu.memory_space<smem>>
    %340 = vector.broadcast %339 : f32 to vector<2x4x98xf32>
    %341 = arith.mulf %340, %258 : vector<2x4x98xf32>
    %342 = arith.addf %338, %341 : vector<2x4x98xf32>
    %c64 = arith.constant 64 : index
    %343 = memref.load %arg4[%c64] : memref<147xf32, #tpu.memory_space<smem>>
    %344 = vector.broadcast %343 : f32 to vector<2x4x98xf32>
    %345 = arith.mulf %344, %268 : vector<2x4x98xf32>
    %346 = arith.addf %342, %345 : vector<2x4x98xf32>
    %c129 = arith.constant 129 : index
    %347 = memref.load %arg4[%c129] : memref<147xf32, #tpu.memory_space<smem>>
    %348 = vector.broadcast %347 : f32 to vector<2x4x98xf32>
    %349 = arith.addf %346, %348 : vector<2x4x98xf32>
    %cst_51 = arith.constant 0.000000e+00 : f32
    %350 = vector.broadcast %cst_51 : f32 to vector<2x4x98xf32>
    %351 = arith.maximumf %349, %350 : vector<2x4x98xf32>
    %c138 = arith.constant 138 : index
    %352 = memref.load %arg4[%c138] : memref<147xf32, #tpu.memory_space<smem>>
    %353 = vector.broadcast %352 : f32 to vector<2x4x98xf32>
    %354 = arith.mulf %353, %351 : vector<2x4x98xf32>
    %355 = arith.addf %311, %354 : vector<2x4x98xf32>
    %c65 = arith.constant 65 : index
    %356 = memref.load %arg4[%c65] : memref<147xf32, #tpu.memory_space<smem>>
    %357 = vector.broadcast %356 : f32 to vector<2x4x98xf32>
    %358 = arith.mulf %357, %188 : vector<2x4x98xf32>
    %c66 = arith.constant 66 : index
    %359 = memref.load %arg4[%c66] : memref<147xf32, #tpu.memory_space<smem>>
    %360 = vector.broadcast %359 : f32 to vector<2x4x98xf32>
    %361 = arith.mulf %360, %198 : vector<2x4x98xf32>
    %362 = arith.addf %358, %361 : vector<2x4x98xf32>
    %c67 = arith.constant 67 : index
    %363 = memref.load %arg4[%c67] : memref<147xf32, #tpu.memory_space<smem>>
    %364 = vector.broadcast %363 : f32 to vector<2x4x98xf32>
    %365 = arith.mulf %364, %208 : vector<2x4x98xf32>
    %366 = arith.addf %362, %365 : vector<2x4x98xf32>
    %c68 = arith.constant 68 : index
    %367 = memref.load %arg4[%c68] : memref<147xf32, #tpu.memory_space<smem>>
    %368 = vector.broadcast %367 : f32 to vector<2x4x98xf32>
    %369 = arith.mulf %368, %218 : vector<2x4x98xf32>
    %370 = arith.addf %366, %369 : vector<2x4x98xf32>
    %c69 = arith.constant 69 : index
    %371 = memref.load %arg4[%c69] : memref<147xf32, #tpu.memory_space<smem>>
    %372 = vector.broadcast %371 : f32 to vector<2x4x98xf32>
    %373 = arith.mulf %372, %228 : vector<2x4x98xf32>
    %374 = arith.addf %370, %373 : vector<2x4x98xf32>
    %c70 = arith.constant 70 : index
    %375 = memref.load %arg4[%c70] : memref<147xf32, #tpu.memory_space<smem>>
    %376 = vector.broadcast %375 : f32 to vector<2x4x98xf32>
    %377 = arith.mulf %376, %238 : vector<2x4x98xf32>
    %378 = arith.addf %374, %377 : vector<2x4x98xf32>
    %c71 = arith.constant 71 : index
    %379 = memref.load %arg4[%c71] : memref<147xf32, #tpu.memory_space<smem>>
    %380 = vector.broadcast %379 : f32 to vector<2x4x98xf32>
    %381 = arith.mulf %380, %248 : vector<2x4x98xf32>
    %382 = arith.addf %378, %381 : vector<2x4x98xf32>
    %c72 = arith.constant 72 : index
    %383 = memref.load %arg4[%c72] : memref<147xf32, #tpu.memory_space<smem>>
    %384 = vector.broadcast %383 : f32 to vector<2x4x98xf32>
    %385 = arith.mulf %384, %258 : vector<2x4x98xf32>
    %386 = arith.addf %382, %385 : vector<2x4x98xf32>
    %c73 = arith.constant 73 : index
    %387 = memref.load %arg4[%c73] : memref<147xf32, #tpu.memory_space<smem>>
    %388 = vector.broadcast %387 : f32 to vector<2x4x98xf32>
    %389 = arith.mulf %388, %268 : vector<2x4x98xf32>
    %390 = arith.addf %386, %389 : vector<2x4x98xf32>
    %c130 = arith.constant 130 : index
    %391 = memref.load %arg4[%c130] : memref<147xf32, #tpu.memory_space<smem>>
    %392 = vector.broadcast %391 : f32 to vector<2x4x98xf32>
    %393 = arith.addf %390, %392 : vector<2x4x98xf32>
    %cst_52 = arith.constant 0.000000e+00 : f32
    %394 = vector.broadcast %cst_52 : f32 to vector<2x4x98xf32>
    %395 = arith.maximumf %393, %394 : vector<2x4x98xf32>
    %c139 = arith.constant 139 : index
    %396 = memref.load %arg4[%c139] : memref<147xf32, #tpu.memory_space<smem>>
    %397 = vector.broadcast %396 : f32 to vector<2x4x98xf32>
    %398 = arith.mulf %397, %395 : vector<2x4x98xf32>
    %399 = arith.addf %355, %398 : vector<2x4x98xf32>
    %c74 = arith.constant 74 : index
    %400 = memref.load %arg4[%c74] : memref<147xf32, #tpu.memory_space<smem>>
    %401 = vector.broadcast %400 : f32 to vector<2x4x98xf32>
    %402 = arith.mulf %401, %188 : vector<2x4x98xf32>
    %c75 = arith.constant 75 : index
    %403 = memref.load %arg4[%c75] : memref<147xf32, #tpu.memory_space<smem>>
    %404 = vector.broadcast %403 : f32 to vector<2x4x98xf32>
    %405 = arith.mulf %404, %198 : vector<2x4x98xf32>
    %406 = arith.addf %402, %405 : vector<2x4x98xf32>
    %c76 = arith.constant 76 : index
    %407 = memref.load %arg4[%c76] : memref<147xf32, #tpu.memory_space<smem>>
    %408 = vector.broadcast %407 : f32 to vector<2x4x98xf32>
    %409 = arith.mulf %408, %208 : vector<2x4x98xf32>
    %410 = arith.addf %406, %409 : vector<2x4x98xf32>
    %c77 = arith.constant 77 : index
    %411 = memref.load %arg4[%c77] : memref<147xf32, #tpu.memory_space<smem>>
    %412 = vector.broadcast %411 : f32 to vector<2x4x98xf32>
    %413 = arith.mulf %412, %218 : vector<2x4x98xf32>
    %414 = arith.addf %410, %413 : vector<2x4x98xf32>
    %c78 = arith.constant 78 : index
    %415 = memref.load %arg4[%c78] : memref<147xf32, #tpu.memory_space<smem>>
    %416 = vector.broadcast %415 : f32 to vector<2x4x98xf32>
    %417 = arith.mulf %416, %228 : vector<2x4x98xf32>
    %418 = arith.addf %414, %417 : vector<2x4x98xf32>
    %c79 = arith.constant 79 : index
    %419 = memref.load %arg4[%c79] : memref<147xf32, #tpu.memory_space<smem>>
    %420 = vector.broadcast %419 : f32 to vector<2x4x98xf32>
    %421 = arith.mulf %420, %238 : vector<2x4x98xf32>
    %422 = arith.addf %418, %421 : vector<2x4x98xf32>
    %c80 = arith.constant 80 : index
    %423 = memref.load %arg4[%c80] : memref<147xf32, #tpu.memory_space<smem>>
    %424 = vector.broadcast %423 : f32 to vector<2x4x98xf32>
    %425 = arith.mulf %424, %248 : vector<2x4x98xf32>
    %426 = arith.addf %422, %425 : vector<2x4x98xf32>
    %c81 = arith.constant 81 : index
    %427 = memref.load %arg4[%c81] : memref<147xf32, #tpu.memory_space<smem>>
    %428 = vector.broadcast %427 : f32 to vector<2x4x98xf32>
    %429 = arith.mulf %428, %258 : vector<2x4x98xf32>
    %430 = arith.addf %426, %429 : vector<2x4x98xf32>
    %c82 = arith.constant 82 : index
    %431 = memref.load %arg4[%c82] : memref<147xf32, #tpu.memory_space<smem>>
    %432 = vector.broadcast %431 : f32 to vector<2x4x98xf32>
    %433 = arith.mulf %432, %268 : vector<2x4x98xf32>
    %434 = arith.addf %430, %433 : vector<2x4x98xf32>
    %c131 = arith.constant 131 : index
    %435 = memref.load %arg4[%c131] : memref<147xf32, #tpu.memory_space<smem>>
    %436 = vector.broadcast %435 : f32 to vector<2x4x98xf32>
    %437 = arith.addf %434, %436 : vector<2x4x98xf32>
    %cst_53 = arith.constant 0.000000e+00 : f32
    %438 = vector.broadcast %cst_53 : f32 to vector<2x4x98xf32>
    %439 = arith.maximumf %437, %438 : vector<2x4x98xf32>
    %c140 = arith.constant 140 : index
    %440 = memref.load %arg4[%c140] : memref<147xf32, #tpu.memory_space<smem>>
    %441 = vector.broadcast %440 : f32 to vector<2x4x98xf32>
    %442 = arith.mulf %441, %439 : vector<2x4x98xf32>
    %443 = arith.addf %399, %442 : vector<2x4x98xf32>
    %c83 = arith.constant 83 : index
    %444 = memref.load %arg4[%c83] : memref<147xf32, #tpu.memory_space<smem>>
    %445 = vector.broadcast %444 : f32 to vector<2x4x98xf32>
    %446 = arith.mulf %445, %188 : vector<2x4x98xf32>
    %c84 = arith.constant 84 : index
    %447 = memref.load %arg4[%c84] : memref<147xf32, #tpu.memory_space<smem>>
    %448 = vector.broadcast %447 : f32 to vector<2x4x98xf32>
    %449 = arith.mulf %448, %198 : vector<2x4x98xf32>
    %450 = arith.addf %446, %449 : vector<2x4x98xf32>
    %c85 = arith.constant 85 : index
    %451 = memref.load %arg4[%c85] : memref<147xf32, #tpu.memory_space<smem>>
    %452 = vector.broadcast %451 : f32 to vector<2x4x98xf32>
    %453 = arith.mulf %452, %208 : vector<2x4x98xf32>
    %454 = arith.addf %450, %453 : vector<2x4x98xf32>
    %c86 = arith.constant 86 : index
    %455 = memref.load %arg4[%c86] : memref<147xf32, #tpu.memory_space<smem>>
    %456 = vector.broadcast %455 : f32 to vector<2x4x98xf32>
    %457 = arith.mulf %456, %218 : vector<2x4x98xf32>
    %458 = arith.addf %454, %457 : vector<2x4x98xf32>
    %c87 = arith.constant 87 : index
    %459 = memref.load %arg4[%c87] : memref<147xf32, #tpu.memory_space<smem>>
    %460 = vector.broadcast %459 : f32 to vector<2x4x98xf32>
    %461 = arith.mulf %460, %228 : vector<2x4x98xf32>
    %462 = arith.addf %458, %461 : vector<2x4x98xf32>
    %c88 = arith.constant 88 : index
    %463 = memref.load %arg4[%c88] : memref<147xf32, #tpu.memory_space<smem>>
    %464 = vector.broadcast %463 : f32 to vector<2x4x98xf32>
    %465 = arith.mulf %464, %238 : vector<2x4x98xf32>
    %466 = arith.addf %462, %465 : vector<2x4x98xf32>
    %c89 = arith.constant 89 : index
    %467 = memref.load %arg4[%c89] : memref<147xf32, #tpu.memory_space<smem>>
    %468 = vector.broadcast %467 : f32 to vector<2x4x98xf32>
    %469 = arith.mulf %468, %248 : vector<2x4x98xf32>
    %470 = arith.addf %466, %469 : vector<2x4x98xf32>
    %c90 = arith.constant 90 : index
    %471 = memref.load %arg4[%c90] : memref<147xf32, #tpu.memory_space<smem>>
    %472 = vector.broadcast %471 : f32 to vector<2x4x98xf32>
    %473 = arith.mulf %472, %258 : vector<2x4x98xf32>
    %474 = arith.addf %470, %473 : vector<2x4x98xf32>
    %c91 = arith.constant 91 : index
    %475 = memref.load %arg4[%c91] : memref<147xf32, #tpu.memory_space<smem>>
    %476 = vector.broadcast %475 : f32 to vector<2x4x98xf32>
    %477 = arith.mulf %476, %268 : vector<2x4x98xf32>
    %478 = arith.addf %474, %477 : vector<2x4x98xf32>
    %c132 = arith.constant 132 : index
    %479 = memref.load %arg4[%c132] : memref<147xf32, #tpu.memory_space<smem>>
    %480 = vector.broadcast %479 : f32 to vector<2x4x98xf32>
    %481 = arith.addf %478, %480 : vector<2x4x98xf32>
    %cst_54 = arith.constant 0.000000e+00 : f32
    %482 = vector.broadcast %cst_54 : f32 to vector<2x4x98xf32>
    %483 = arith.maximumf %481, %482 : vector<2x4x98xf32>
    %c141 = arith.constant 141 : index
    %484 = memref.load %arg4[%c141] : memref<147xf32, #tpu.memory_space<smem>>
    %485 = vector.broadcast %484 : f32 to vector<2x4x98xf32>
    %486 = arith.mulf %485, %483 : vector<2x4x98xf32>
    %487 = arith.addf %443, %486 : vector<2x4x98xf32>
    %c92 = arith.constant 92 : index
    %488 = memref.load %arg4[%c92] : memref<147xf32, #tpu.memory_space<smem>>
    %489 = vector.broadcast %488 : f32 to vector<2x4x98xf32>
    %490 = arith.mulf %489, %188 : vector<2x4x98xf32>
    %c93 = arith.constant 93 : index
    %491 = memref.load %arg4[%c93] : memref<147xf32, #tpu.memory_space<smem>>
    %492 = vector.broadcast %491 : f32 to vector<2x4x98xf32>
    %493 = arith.mulf %492, %198 : vector<2x4x98xf32>
    %494 = arith.addf %490, %493 : vector<2x4x98xf32>
    %c94 = arith.constant 94 : index
    %495 = memref.load %arg4[%c94] : memref<147xf32, #tpu.memory_space<smem>>
    %496 = vector.broadcast %495 : f32 to vector<2x4x98xf32>
    %497 = arith.mulf %496, %208 : vector<2x4x98xf32>
    %498 = arith.addf %494, %497 : vector<2x4x98xf32>
    %c95 = arith.constant 95 : index
    %499 = memref.load %arg4[%c95] : memref<147xf32, #tpu.memory_space<smem>>
    %500 = vector.broadcast %499 : f32 to vector<2x4x98xf32>
    %501 = arith.mulf %500, %218 : vector<2x4x98xf32>
    %502 = arith.addf %498, %501 : vector<2x4x98xf32>
    %c96 = arith.constant 96 : index
    %503 = memref.load %arg4[%c96] : memref<147xf32, #tpu.memory_space<smem>>
    %504 = vector.broadcast %503 : f32 to vector<2x4x98xf32>
    %505 = arith.mulf %504, %228 : vector<2x4x98xf32>
    %506 = arith.addf %502, %505 : vector<2x4x98xf32>
    %c97 = arith.constant 97 : index
    %507 = memref.load %arg4[%c97] : memref<147xf32, #tpu.memory_space<smem>>
    %508 = vector.broadcast %507 : f32 to vector<2x4x98xf32>
    %509 = arith.mulf %508, %238 : vector<2x4x98xf32>
    %510 = arith.addf %506, %509 : vector<2x4x98xf32>
    %c98 = arith.constant 98 : index
    %511 = memref.load %arg4[%c98] : memref<147xf32, #tpu.memory_space<smem>>
    %512 = vector.broadcast %511 : f32 to vector<2x4x98xf32>
    %513 = arith.mulf %512, %248 : vector<2x4x98xf32>
    %514 = arith.addf %510, %513 : vector<2x4x98xf32>
    %c99 = arith.constant 99 : index
    %515 = memref.load %arg4[%c99] : memref<147xf32, #tpu.memory_space<smem>>
    %516 = vector.broadcast %515 : f32 to vector<2x4x98xf32>
    %517 = arith.mulf %516, %258 : vector<2x4x98xf32>
    %518 = arith.addf %514, %517 : vector<2x4x98xf32>
    %c100 = arith.constant 100 : index
    %519 = memref.load %arg4[%c100] : memref<147xf32, #tpu.memory_space<smem>>
    %520 = vector.broadcast %519 : f32 to vector<2x4x98xf32>
    %521 = arith.mulf %520, %268 : vector<2x4x98xf32>
    %522 = arith.addf %518, %521 : vector<2x4x98xf32>
    %c133 = arith.constant 133 : index
    %523 = memref.load %arg4[%c133] : memref<147xf32, #tpu.memory_space<smem>>
    %524 = vector.broadcast %523 : f32 to vector<2x4x98xf32>
    %525 = arith.addf %522, %524 : vector<2x4x98xf32>
    %cst_55 = arith.constant 0.000000e+00 : f32
    %526 = vector.broadcast %cst_55 : f32 to vector<2x4x98xf32>
    %527 = arith.maximumf %525, %526 : vector<2x4x98xf32>
    %c142 = arith.constant 142 : index
    %528 = memref.load %arg4[%c142] : memref<147xf32, #tpu.memory_space<smem>>
    %529 = vector.broadcast %528 : f32 to vector<2x4x98xf32>
    %530 = arith.mulf %529, %527 : vector<2x4x98xf32>
    %531 = arith.addf %487, %530 : vector<2x4x98xf32>
    %c101 = arith.constant 101 : index
    %532 = memref.load %arg4[%c101] : memref<147xf32, #tpu.memory_space<smem>>
    %533 = vector.broadcast %532 : f32 to vector<2x4x98xf32>
    %534 = arith.mulf %533, %188 : vector<2x4x98xf32>
    %c102 = arith.constant 102 : index
    %535 = memref.load %arg4[%c102] : memref<147xf32, #tpu.memory_space<smem>>
    %536 = vector.broadcast %535 : f32 to vector<2x4x98xf32>
    %537 = arith.mulf %536, %198 : vector<2x4x98xf32>
    %538 = arith.addf %534, %537 : vector<2x4x98xf32>
    %c103 = arith.constant 103 : index
    %539 = memref.load %arg4[%c103] : memref<147xf32, #tpu.memory_space<smem>>
    %540 = vector.broadcast %539 : f32 to vector<2x4x98xf32>
    %541 = arith.mulf %540, %208 : vector<2x4x98xf32>
    %542 = arith.addf %538, %541 : vector<2x4x98xf32>
    %c104 = arith.constant 104 : index
    %543 = memref.load %arg4[%c104] : memref<147xf32, #tpu.memory_space<smem>>
    %544 = vector.broadcast %543 : f32 to vector<2x4x98xf32>
    %545 = arith.mulf %544, %218 : vector<2x4x98xf32>
    %546 = arith.addf %542, %545 : vector<2x4x98xf32>
    %c105 = arith.constant 105 : index
    %547 = memref.load %arg4[%c105] : memref<147xf32, #tpu.memory_space<smem>>
    %548 = vector.broadcast %547 : f32 to vector<2x4x98xf32>
    %549 = arith.mulf %548, %228 : vector<2x4x98xf32>
    %550 = arith.addf %546, %549 : vector<2x4x98xf32>
    %c106 = arith.constant 106 : index
    %551 = memref.load %arg4[%c106] : memref<147xf32, #tpu.memory_space<smem>>
    %552 = vector.broadcast %551 : f32 to vector<2x4x98xf32>
    %553 = arith.mulf %552, %238 : vector<2x4x98xf32>
    %554 = arith.addf %550, %553 : vector<2x4x98xf32>
    %c107 = arith.constant 107 : index
    %555 = memref.load %arg4[%c107] : memref<147xf32, #tpu.memory_space<smem>>
    %556 = vector.broadcast %555 : f32 to vector<2x4x98xf32>
    %557 = arith.mulf %556, %248 : vector<2x4x98xf32>
    %558 = arith.addf %554, %557 : vector<2x4x98xf32>
    %c108 = arith.constant 108 : index
    %559 = memref.load %arg4[%c108] : memref<147xf32, #tpu.memory_space<smem>>
    %560 = vector.broadcast %559 : f32 to vector<2x4x98xf32>
    %561 = arith.mulf %560, %258 : vector<2x4x98xf32>
    %562 = arith.addf %558, %561 : vector<2x4x98xf32>
    %c109 = arith.constant 109 : index
    %563 = memref.load %arg4[%c109] : memref<147xf32, #tpu.memory_space<smem>>
    %564 = vector.broadcast %563 : f32 to vector<2x4x98xf32>
    %565 = arith.mulf %564, %268 : vector<2x4x98xf32>
    %566 = arith.addf %562, %565 : vector<2x4x98xf32>
    %c134 = arith.constant 134 : index
    %567 = memref.load %arg4[%c134] : memref<147xf32, #tpu.memory_space<smem>>
    %568 = vector.broadcast %567 : f32 to vector<2x4x98xf32>
    %569 = arith.addf %566, %568 : vector<2x4x98xf32>
    %cst_56 = arith.constant 0.000000e+00 : f32
    %570 = vector.broadcast %cst_56 : f32 to vector<2x4x98xf32>
    %571 = arith.maximumf %569, %570 : vector<2x4x98xf32>
    %c143 = arith.constant 143 : index
    %572 = memref.load %arg4[%c143] : memref<147xf32, #tpu.memory_space<smem>>
    %573 = vector.broadcast %572 : f32 to vector<2x4x98xf32>
    %574 = arith.mulf %573, %571 : vector<2x4x98xf32>
    %575 = arith.addf %531, %574 : vector<2x4x98xf32>
    %c110 = arith.constant 110 : index
    %576 = memref.load %arg4[%c110] : memref<147xf32, #tpu.memory_space<smem>>
    %577 = vector.broadcast %576 : f32 to vector<2x4x98xf32>
    %578 = arith.mulf %577, %188 : vector<2x4x98xf32>
    %c111 = arith.constant 111 : index
    %579 = memref.load %arg4[%c111] : memref<147xf32, #tpu.memory_space<smem>>
    %580 = vector.broadcast %579 : f32 to vector<2x4x98xf32>
    %581 = arith.mulf %580, %198 : vector<2x4x98xf32>
    %582 = arith.addf %578, %581 : vector<2x4x98xf32>
    %c112 = arith.constant 112 : index
    %583 = memref.load %arg4[%c112] : memref<147xf32, #tpu.memory_space<smem>>
    %584 = vector.broadcast %583 : f32 to vector<2x4x98xf32>
    %585 = arith.mulf %584, %208 : vector<2x4x98xf32>
    %586 = arith.addf %582, %585 : vector<2x4x98xf32>
    %c113 = arith.constant 113 : index
    %587 = memref.load %arg4[%c113] : memref<147xf32, #tpu.memory_space<smem>>
    %588 = vector.broadcast %587 : f32 to vector<2x4x98xf32>
    %589 = arith.mulf %588, %218 : vector<2x4x98xf32>
    %590 = arith.addf %586, %589 : vector<2x4x98xf32>
    %c114 = arith.constant 114 : index
    %591 = memref.load %arg4[%c114] : memref<147xf32, #tpu.memory_space<smem>>
    %592 = vector.broadcast %591 : f32 to vector<2x4x98xf32>
    %593 = arith.mulf %592, %228 : vector<2x4x98xf32>
    %594 = arith.addf %590, %593 : vector<2x4x98xf32>
    %c115 = arith.constant 115 : index
    %595 = memref.load %arg4[%c115] : memref<147xf32, #tpu.memory_space<smem>>
    %596 = vector.broadcast %595 : f32 to vector<2x4x98xf32>
    %597 = arith.mulf %596, %238 : vector<2x4x98xf32>
    %598 = arith.addf %594, %597 : vector<2x4x98xf32>
    %c116 = arith.constant 116 : index
    %599 = memref.load %arg4[%c116] : memref<147xf32, #tpu.memory_space<smem>>
    %600 = vector.broadcast %599 : f32 to vector<2x4x98xf32>
    %601 = arith.mulf %600, %248 : vector<2x4x98xf32>
    %602 = arith.addf %598, %601 : vector<2x4x98xf32>
    %c117 = arith.constant 117 : index
    %603 = memref.load %arg4[%c117] : memref<147xf32, #tpu.memory_space<smem>>
    %604 = vector.broadcast %603 : f32 to vector<2x4x98xf32>
    %605 = arith.mulf %604, %258 : vector<2x4x98xf32>
    %606 = arith.addf %602, %605 : vector<2x4x98xf32>
    %c118 = arith.constant 118 : index
    %607 = memref.load %arg4[%c118] : memref<147xf32, #tpu.memory_space<smem>>
    %608 = vector.broadcast %607 : f32 to vector<2x4x98xf32>
    %609 = arith.mulf %608, %268 : vector<2x4x98xf32>
    %610 = arith.addf %606, %609 : vector<2x4x98xf32>
    %c135 = arith.constant 135 : index
    %611 = memref.load %arg4[%c135] : memref<147xf32, #tpu.memory_space<smem>>
    %612 = vector.broadcast %611 : f32 to vector<2x4x98xf32>
    %613 = arith.addf %610, %612 : vector<2x4x98xf32>
    %cst_57 = arith.constant 0.000000e+00 : f32
    %614 = vector.broadcast %cst_57 : f32 to vector<2x4x98xf32>
    %615 = arith.maximumf %613, %614 : vector<2x4x98xf32>
    %c144 = arith.constant 144 : index
    %616 = memref.load %arg4[%c144] : memref<147xf32, #tpu.memory_space<smem>>
    %617 = vector.broadcast %616 : f32 to vector<2x4x98xf32>
    %618 = arith.mulf %617, %615 : vector<2x4x98xf32>
    %619 = arith.addf %575, %618 : vector<2x4x98xf32>
    %c119 = arith.constant 119 : index
    %620 = memref.load %arg4[%c119] : memref<147xf32, #tpu.memory_space<smem>>
    %621 = vector.broadcast %620 : f32 to vector<2x4x98xf32>
    %622 = arith.mulf %621, %188 : vector<2x4x98xf32>
    %c120 = arith.constant 120 : index
    %623 = memref.load %arg4[%c120] : memref<147xf32, #tpu.memory_space<smem>>
    %624 = vector.broadcast %623 : f32 to vector<2x4x98xf32>
    %625 = arith.mulf %624, %198 : vector<2x4x98xf32>
    %626 = arith.addf %622, %625 : vector<2x4x98xf32>
    %c121 = arith.constant 121 : index
    %627 = memref.load %arg4[%c121] : memref<147xf32, #tpu.memory_space<smem>>
    %628 = vector.broadcast %627 : f32 to vector<2x4x98xf32>
    %629 = arith.mulf %628, %208 : vector<2x4x98xf32>
    %630 = arith.addf %626, %629 : vector<2x4x98xf32>
    %c122 = arith.constant 122 : index
    %631 = memref.load %arg4[%c122] : memref<147xf32, #tpu.memory_space<smem>>
    %632 = vector.broadcast %631 : f32 to vector<2x4x98xf32>
    %633 = arith.mulf %632, %218 : vector<2x4x98xf32>
    %634 = arith.addf %630, %633 : vector<2x4x98xf32>
    %c123 = arith.constant 123 : index
    %635 = memref.load %arg4[%c123] : memref<147xf32, #tpu.memory_space<smem>>
    %636 = vector.broadcast %635 : f32 to vector<2x4x98xf32>
    %637 = arith.mulf %636, %228 : vector<2x4x98xf32>
    %638 = arith.addf %634, %637 : vector<2x4x98xf32>
    %c124 = arith.constant 124 : index
    %639 = memref.load %arg4[%c124] : memref<147xf32, #tpu.memory_space<smem>>
    %640 = vector.broadcast %639 : f32 to vector<2x4x98xf32>
    %641 = arith.mulf %640, %238 : vector<2x4x98xf32>
    %642 = arith.addf %638, %641 : vector<2x4x98xf32>
    %c125 = arith.constant 125 : index
    %643 = memref.load %arg4[%c125] : memref<147xf32, #tpu.memory_space<smem>>
    %644 = vector.broadcast %643 : f32 to vector<2x4x98xf32>
    %645 = arith.mulf %644, %248 : vector<2x4x98xf32>
    %646 = arith.addf %642, %645 : vector<2x4x98xf32>
    %c126 = arith.constant 126 : index
    %647 = memref.load %arg4[%c126] : memref<147xf32, #tpu.memory_space<smem>>
    %648 = vector.broadcast %647 : f32 to vector<2x4x98xf32>
    %649 = arith.mulf %648, %258 : vector<2x4x98xf32>
    %650 = arith.addf %646, %649 : vector<2x4x98xf32>
    %c127 = arith.constant 127 : index
    %651 = memref.load %arg4[%c127] : memref<147xf32, #tpu.memory_space<smem>>
    %652 = vector.broadcast %651 : f32 to vector<2x4x98xf32>
    %653 = arith.mulf %652, %268 : vector<2x4x98xf32>
    %654 = arith.addf %650, %653 : vector<2x4x98xf32>
    %c136 = arith.constant 136 : index
    %655 = memref.load %arg4[%c136] : memref<147xf32, #tpu.memory_space<smem>>
    %656 = vector.broadcast %655 : f32 to vector<2x4x98xf32>
    %657 = arith.addf %654, %656 : vector<2x4x98xf32>
    %cst_58 = arith.constant 0.000000e+00 : f32
    %658 = vector.broadcast %cst_58 : f32 to vector<2x4x98xf32>
    %659 = arith.maximumf %657, %658 : vector<2x4x98xf32>
    %c145 = arith.constant 145 : index
    %660 = memref.load %arg4[%c145] : memref<147xf32, #tpu.memory_space<smem>>
    %661 = vector.broadcast %660 : f32 to vector<2x4x98xf32>
    %662 = arith.mulf %661, %659 : vector<2x4x98xf32>
    %663 = arith.addf %619, %662 : vector<2x4x98xf32>
    %c146 = arith.constant 146 : index
    %664 = memref.load %arg4[%c146] : memref<147xf32, #tpu.memory_space<smem>>
    %665 = vector.broadcast %664 : f32 to vector<2x4x98xf32>
    %666 = arith.addf %663, %665 : vector<2x4x98xf32>
    %cst_59 = arith.constant 0.000000e+00 : f32
    %667 = vector.broadcast %cst_59 : f32 to vector<2x4x98xf32>
    %668 = arith.maximumf %666, %667 : vector<2x4x98xf32>
    %669 = vector.extract_strided_slice %668 {offsets = [0, 0, 0], sizes = [1, 4, 98], strides = [1, 1, 1]} : vector<2x4x98xf32> to vector<1x4x98xf32>
    %670 = vector.shape_cast %669 : vector<1x4x98xf32> to vector<4x98xf32>
    %671 = vector.extract_strided_slice %668 {offsets = [1, 0, 0], sizes = [1, 4, 98], strides = [1, 1, 1]} : vector<2x4x98xf32> to vector<1x4x98xf32>
    %672 = vector.shape_cast %671 : vector<1x4x98xf32> to vector<4x98xf32>
    %673 = arith.mulf %670, %672 : vector<4x98xf32>
    %674 = arith.negf %673 : vector<4x98xf32>
    %675 = math.exp %674 : vector<4x98xf32>
    %cst_60 = arith.constant 1.000000e+00 : f32
    %676 = vector.broadcast %cst_60 : f32 to vector<4x98xf32>
    %677 = arith.addf %676, %675 : vector<4x98xf32>
    %678 = arith.divf %676, %677 : vector<4x98xf32>
    %c0_61 = arith.constant 0 : index
    %c0_62 = arith.constant 0 : index
    %679 = vector.load %arg5[%c0_61, %c0_62] : memref<4x98xf32, #tpu.memory_space<vmem>>, vector<4x98xf32>
    tpu.vector_store %arg5[%c0_61, %c0_62], %678 {strides = array<i32>} : memref<4x98xf32, #tpu.memory_space<vmem>>, vector<4x98xf32>,
    return
  }
}

</mosaic_0001>

<bundles_post_ra>
// kernel: siamese_forward.1
= control target key start
LH: loop header
LB: loop body
LE: loop exit
PB: predicated region body
PF: predicated region fallthrough
CT: control target
= control target key end

     0   :  { %s2551_s0 = inlined_call_operand.vmem [shape: f32[2,4,112], index: 0, kind: input, shape index: {}]   ;;  %s2552_s1 = inlined_call_operand.vmem [shape: f32[2,4,112], index: 1, kind: input, shape index: {}]   ;;  %s2553_s2 = inlined_call_operand.vmem [shape: f32[2,4,112], index: 2, kind: input, shape index: {}]   ;;  %s2554_s3 = inlined_call_operand.vmem [shape: f32[2,4,112], index: 3, kind: input, shape index: {}]   ;;  %s2555_s4 = inlined_call_operand.vmem [shape: f32[147], index: 4, kind: input, shape index: {}]   ;;  %s2556_s5 = inlined_call_operand.vmem [shape: f32[4,98], index: 5, kind: output, shape index: {}]  }
   0x1   :  { %2750 = sst [smem:[#allocation125_spill]] %s2556_s5 }
   0x2   :  { %10 = vsyncpa [#allocation3], 0  ;;  %s25_s20 = sshll.u32 %s2555_s4, 4  ;;  %s26_s20 = int_to_ptr.vmem [resolvable:$true] %s25_s20 }
   0x3   :  { %s1152_s21 = scalar_lea.vmem %s26_s20, 32  ;;  %p1157_p1 = scmp.lt.s32.totalorder %s26_s20, %s26_s20 }
   0x4   :  { %p1153_p0 = scmp.ne.s32.totalorder %s26_s20, %s1152_s21  ;;  %p1158_p2 = scmp.lt.s32.totalorder %s1152_s21, %s1152_s21 }
   0x6   :  { %p1159_p3 = por %p1158_p2, %p1157_p1 }
   0x8   :  { %p1160_p4 = pnand %p1159_p3, %p1153_p0 }
   0xa   :  { %1163 = shalt.err (!%p1160_p4)
}
   0xb   :  { %s1166_s22 = smov [#allocation2]  }
   0xc   :  { %28 = dma.vmem_to_smem %s26_s20, 32, %s1166_s22, [#allocation3]  }
   0xd   :  { %1164 = dma.done.wait [#allocation3], 32  }
   0xe   :  { %1165 = vsyncadd [#allocation3], 4294967264 }
   0xf   :  { %32 = sfence }
  0x10   :  { %v33_v0 = vlaneseq  ;;  %s1003_s23 = sld [smem:[#allocation2 + $0x3]]  ;;  %v1209_v4 = vld [vmem:[%s2552_s1] sm:$0xf]  ;;  %v1219_v8 = vld [vmem:[%s2552_s1 + $0x4] sm:$0xf]  ;;  %vm991_vm1 = vcmask 797696  }
  0x11   :  { %s1004_s24 = sld [smem:[#allocation2 + $0xc]]  ;;  %v1214_v6 = vld [vmem:[%s2551_s0] sm:$0xf]  ;;  %v1224_v9 = vld [vmem:[%s2551_s0 + $0x4] sm:$0xf]  ;;  %s1167_s0 = smov 121  }
  0x12   :  { %v34_v1 = vshrl.u32 %v33_v0, 7  ;;  %s48_s25 = sld [smem:[#allocation2]]  ;;  %v1257_v27 = vld [vmem:[%s2553_s2 + $0x4] sm:$0xf]  ;;  %v1262_v28 = vld [vmem:[%s2553_s2] sm:$0xf] }
  0x13   :  { %s998_s26 = sld [smem:[#allocation2 + $0x9]]  ;;  %v1283_v43 = vld [vmem:[%s2554_s3 + $0x4] sm:$0xf]  ;;  %v1288_v44 = vld [vmem:[%s2554_s3] sm:$0xf] }
  0x14   :  { %v39_v2 = vand.u32 1, %v34_v1  ;;  %s1005_s4 = sld [smem:[#allocation2 + $0x4]] }
  0x15   :  { %s1006_s27 = sld [smem:[#allocation2 + $0xd]] }
  0x16   :  { %vm1202_vm0 = vcmp.eq.s32.totalorder %v39_v2, 0  ;;  %v97_v5 = vstv %s1003_s23  ;;  %s1226_s11 = sld [smem:[#allocation2 + $0x5]] }
  0x17   :  { %v98_v7 = vstv %s1004_s24  ;;  %s1230_s12 = sld [smem:[#allocation2 + $0xe]] }
  0x18   :  { %v99_v10 = vsel %vm1202_vm0, %v97_v5, %v98_v7  ;;  %v50_v11 = vstv %s48_s25  ;;  %s1245_s1 = sld [smem:[#allocation2 + $0x6]] }
  0x19   :  { %v146_v12 = vmul.f32 %v99_v10, %v1209_v4  ;;  %v51_v13 = vstv %s998_s26  ;;  %v110_v14 = vmul.f32 %v99_v10, %v1214_v6  ;;  %v147_v16 = vmul.f32 %v99_v10, %v1219_v8  ;;  %s1248_s13 = sld [smem:[#allocation2 + $0xf]] }
  0x1a   :  { %v52_v15 = vsel %vm1202_vm0, %v50_v11, %v51_v13  ;;  %v111_v17 = vmul.f32 %v99_v10, %v1224_v9  ;;  %v102_v18 = vstv %s1005_s4  ;;  %s999_s14 = sld [smem:[#allocation2 + $0x1]] }
  0x1b   :  { %150 = vrot.lane.b32.xlu1 %v146_v12, %s1167_s0  ;;  %114 = vrot.lane.b32.xlu0 %v110_v14, %s1167_s0  ;;  %v71_v19 = vmul.f32 %v1214_v6, %v52_v15  ;;  %v103_v20 = vstv %s1006_s27  ;;  %v83_v21 = vmul.f32 %v1209_v4, %v52_v15  ;;  %v84_v22 = vmul.f32 %v1219_v8, %v52_v15  ;;  %s1000_s15 = sld [smem:[#allocation2 + $0xa]]  ;;  %s1168_s27 = smov 114  }
  0x1c   :  { %v104_v23 = vsel %vm1202_vm0, %v102_v18, %v103_v20  ;;  %v72_v24 = vmul.f32 %v1224_v9, %v52_v15  ;;  %v107_v29 = vstv %s1226_s11  ;;  %s1001_s20 = sld [smem:[#allocation2 + $0x2]] }
  0x1d   :  { %v123_v25 = vmul.f32 %v104_v23, %v1219_v8  ;;  %v122_v26 = vmul.f32 %v104_v23, %v1209_v4  ;;  %v108_v30 = vstv %s1230_s12  ;;  %s1002_s21 = sld [smem:[#allocation2 + $0xb]]  ;;  %v159_v31 = vmul.f32 %v104_v23, %v1257_v27 }
  0x1e   :  { %v158_v32 = vmul.f32 %v104_v23, %v1262_v28  ;;  %v109_v33 = vsel %vm1202_vm0, %v107_v29, %v108_v30  ;;  %v184_v37 = vstv %s1245_s1  ;;  %s1290_s25 = sld [smem:[#allocation2 + $0x7]] }
  0x1f   :  { %152 = vrot.lane.b32.xlu1 %v147_v16, %s1167_s0  ;;  %116 = vrot.lane.b32.xlu0 %v111_v17, %s1167_s0  ;;  %v135_v36 = vmul.f32 %v109_v33, %v1257_v27  ;;  %v185_v38 = vstv %s1248_s13  ;;  %v134_v39 = vmul.f32 %v109_v33, %v1262_v28  ;;  %s1297_s26 = sld [smem:[#allocation2 + $0x10]]  ;;  %v171_v57 = vmul.f32 %v109_v33, %v1283_v43 }
  0x20   :  { %v55_v34 = vstv %s999_s14  ;;  %v170_v58 = vmul.f32 %v109_v33, %v1288_v44  ;;  %v186_v60 = vsel %vm1202_vm0, %v184_v37, %v185_v38  ;;  %s1013_s3 = sld [smem:[#allocation2 + $0x8]] }
  0x21   :  { %v56_v35 = vstv %s1000_s15  ;;  %v198_v1 = vmul.f32 %v186_v60, %v1224_v9  ;;  %v197_v2 = vmul.f32 %v186_v60, %v1214_v6  ;;  %s1014_s4 = sld [smem:[#allocation2 + $0x11]]  ;;  %v234_v10 = vmul.f32 %v186_v60, %v1219_v8 }
  0x22   :  { %v60_v40 = vstv %s1001_s20  ;;  %v57_v42 = vsel %vm1202_vm0, %v55_v34, %v56_v35  ;;  %v233_v11 = vmul.f32 %v186_v60, %v1209_v4  ;;  %s1334_s28 = sld [smem:[#allocation2 + $0x12]] }
  0x23   :  { %128 = vrot.lane.b32.xlu1 %v123_v25, %s1167_s0  ;;  %126 = vrot.lane.b32.xlu0 %v122_v26, %s1167_s0  ;;  %v61_v41 = vstv %s1002_s21  ;;  %v87_v46 = vmul.f32 %v1262_v28, %v57_v42  ;;  %v75_v47 = vmul.f32 %v1209_v4, %v57_v42  ;;  %v88_v48 = vmul.f32 %v1257_v27, %v57_v42  ;;  %s1336_s29 = sld [smem:[#allocation2 + $0x13]] }
  0x24   :  { %v62_v45 = vsel %vm1202_vm0, %v60_v40, %v61_v41  ;;  %v76_v52 = vmul.f32 %v1219_v8, %v57_v42  ;;  %v189_v5 = vstv %s1290_s25  ;;  %s1338_s30 = sld [smem:[#allocation2 + $0x14]] }
  0x25   :  { %v91_v49 = vmul.f32 %v1288_v44, %v62_v45  ;;  %v79_v50 = vmul.f32 %v1262_v28, %v62_v45  ;;  %v92_v51 = vmul.f32 %v1283_v43, %v62_v45  ;;  %v89_v53 = vadd.f32 %v87_v46, %v83_v21  ;;  %s1340_s6 = sld [smem:[#allocation2 + $0x16]] }
  0x26   :  { %v77_v54 = vadd.f32 %v75_v47, %v71_v19  ;;  %v90_v55 = vadd.f32 %v88_v48, %v84_v22  ;;  %v80_v56 = vmul.f32 %v1257_v27, %v62_v45  ;;  %v78_v59 = vadd.f32 %v76_v52, %v72_v24  ;;  %s1346_s7 = sld [smem:[#allocation2 + $0x18]] }
  0x27   :  { %164 = vrot.lane.b32.xlu1 %v159_v31, %s1167_s0  ;;  %162 = vrot.lane.b32.xlu0 %v158_v32, %s1167_s0  ;;  %v1310_v61 = vadd.f32 %v91_v49, %v89_v53  ;;  %v190_v7 = vstv %s1297_s26  ;;  %v194_v13 = vstv %s1013_s3  ;;  %s1350_s8 = sld [smem:[#allocation2 + $0x1a]] }
  0x28   :  { %v1312_v62 = vadd.f32 %v79_v50, %v77_v54  ;;  %v1314_v63 = vadd.f32 %v92_v51, %v90_v55  ;;  %v1316_v0 = vadd.f32 %v80_v56, %v78_v59  ;;  %v191_v12 = vsel %vm1202_vm0, %v189_v5, %v190_v7  ;;  %s1352_s9 = sld [smem:[#allocation2 + $0x1c]] }
  0x29   :  { %v210_v6 = vmul.f32 %v191_v12, %v1219_v8  ;;  %v209_v9 = vmul.f32 %v191_v12, %v1209_v4  ;;  %v195_v14 = vstv %s1014_s4  ;;  %v246_v15 = vmul.f32 %v191_v12, %v1257_v27  ;;  %s1354_s10 = sld [smem:[#allocation2 + $0x1e]] }
  0x2a   :  { %2753 = sst [smem:[#allocation5_spill]] %s1338_s30  ;;  %v245_v8 = vmul.f32 %v191_v12, %v1262_v28  ;;  %v196_v4 = vsel %vm1202_vm0, %v194_v13, %v195_v14  ;;  %v271_v24 = vstv %s1334_s28  ;;  %v272_v25 = vstv %s1336_s29 }
  0x2b   :  { %140 = vrot.lane.b32.xlu1 %v135_v36, %s1167_s0  ;;  %138 = vrot.lane.b32.xlu0 %v134_v39, %s1167_s0  ;;  %2754 = sst [smem:[#allocation6_spill]] %s1340_s6  ;;  %v222_v16 = vmul.f32 %v196_v4, %v1257_v27  ;;  %v221_v17 = vmul.f32 %v196_v4, %v1262_v28  ;;  %v258_v18 = vmul.f32 %v196_v4, %v1283_v43  ;;  %v279_v29 = vstv %s1338_s30 }
  0x2c   :  { %2755 = sst [smem:[#allocation7_spill]] %s1346_s7  ;;  %v257_v19 = vmul.f32 %v196_v4, %v1288_v44  ;;  %v1558_v28 = vsel %vm1202_vm0, %v271_v24, %v272_v25  ;;  %v293_v30 = vstv %s1340_s6  ;;  %v307_v31 = vstv %s1346_s7 }
  0x2d   :  { %2756 = sst [smem:[#allocation8_spill]] %s1350_s8  ;;  %v321_v32 = vstv %s1350_s8 }
  0x2e   :  { %2757 = sst [smem:[#allocation9_spill]] %s1352_s9  ;;  %v335_v34 = vstv %s1352_s9 }
  0x2f   :  { %176 = vrot.lane.b32.xlu1 %v171_v57, %s1167_s0  ;;  %174 = vrot.lane.b32.xlu0 %v170_v58, %s1167_s0  ;;  %2758 = sst [smem:[#allocation10_spill]] %s1354_s10  ;;  %v349_v35 = vstv %s1354_s10 }
  0x30   :  { %s1360_s11 = sld [smem:[#allocation2 + $0x20]] }
  0x31   :  { %s1362_s12 = sld [smem:[#allocation2 + $0x22]] }
  0x32   :  { %s1364_s0 = sld [smem:[#allocation2 + $0x24]] }
  0x33   :  { %203 = vrot.lane.b32.xlu1 %v198_v1, %s1168_s27  ;;  %201 = vrot.lane.b32.xlu0 %v197_v2, %s1168_s27  ;;  %s1366_s1 = sld [smem:[#allocation2 + $0x15]] }
  0x34   :  { %s1372_s13 = sld [smem:[#allocation2 + $0x17]] }
  0x35   :  { %s1374_s14 = sld [smem:[#allocation2 + $0x19]] }
  0x36   :  { %2759 = sst [smem:[#allocation11_spill]] %s1360_s11  ;;  %v363_v36 = vstv %s1360_s11 }
  0x37   :  { %239 = vrot.lane.b32.xlu1 %v234_v10, %s1168_s27  ;;  %237 = vrot.lane.b32.xlu0 %v233_v11, %s1168_s27  ;;  %2760 = sst [smem:[#allocation12_spill]] %s1362_s12  ;;  %v377_v37 = vstv %s1362_s12 }
  0x38   :  { %2761 = sst [smem:[#allocation13_spill]] %s1364_s0  ;;  %v391_v38 = vstv %s1364_s0 }
  0x39   :  { %2762 = sst [smem:[#allocation14_spill]] %s1366_s1  ;;  %v2717_v39 = vstv %s1366_s1 }
  0x3a   :  { %2763 = sst [smem:[#allocation15_spill]] %s1372_s13  ;;  %v2718_v40 = vstv %s1372_s13 }
  0x3b   :  { %215 = vrot.lane.b32.xlu1 %v210_v6, %s1168_s27  ;;  %213 = vrot.lane.b32.xlu0 %v209_v9, %s1168_s27  ;;  %2764 = sst [smem:[#allocation16_spill]] %s1374_s14  ;;  %v2719_v41 = vstv %s1374_s14 }
  0x3c   :  { %s1376_s15 = sld [smem:[#allocation2 + $0x26]] }
  0x3d   :  { %s1378_s16 = sld [smem:[#allocation2 + $0x27]] }
  0x3e   :  { %s1382_s17 = sld [smem:[#allocation2 + $0x28]] }
  0x3f   :  { %251 = vrot.lane.b32.xlu1 %v246_v15, %s1168_s27  ;;  %249 = vrot.lane.b32.xlu0 %v245_v8, %s1168_s27  ;;  %s1384_s18 = sld [smem:[#allocation2 + $0x1b]] }
  0x40   :  { %s1386_s19 = sld [smem:[#allocation2 + $0x29]] }
  0x41   :  { %s1388_s20 = sld [smem:[#allocation2 + $0x1d]] }
  0x42   :  { %2765 = sst [smem:[#allocation17_spill]] %s1376_s15  ;;  %v289_v42 = vstv %s1376_s15 }
  0x43   :  { %227 = vrot.lane.b32.xlu1 %v222_v16, %s1168_s27  ;;  %225 = vrot.lane.b32.xlu0 %v221_v17, %s1168_s27  ;;  %2766 = sst [smem:[#allocation18_spill]] %s1378_s16  ;;  %v303_v43 = vstv %s1378_s16 }
  0x44   :  { %2767 = sst [smem:[#allocation19_spill]] %s1382_s17  ;;  %v2743_v44 = vstv %s1382_s17 }
  0x45   :  { %2768 = sst [smem:[#allocation20_spill]] %s1384_s18  ;;  %v2720_v45 = vstv %s1384_s18 }
  0x46   :  { %2769 = sst [smem:[#allocation21_spill]] %s1386_s19  ;;  %v2740_v46 = vstv %s1386_s19 }
  0x47   :  { %263 = vrot.lane.b32.xlu1 %v258_v18, %s1168_s27  ;;  %261 = vrot.lane.b32.xlu0 %v257_v19, %s1168_s27  ;;  %2770 = sst [smem:[#allocation22_spill]] %s1388_s20  ;;  %v2721_v47 = vstv %s1388_s20 }
  0x48   :  { %s1390_s21 = sld [smem:[#allocation2 + $0x2a]] }
  0x49   :  { %s1392_s2 = sld [smem:[#allocation2 + $0x1f]] }
  0x4a   :  { %s1394_s22 = sld [smem:[#allocation2 + $0x2b]] }
  0x4b   :  { %s1396_s23 = sld [smem:[#allocation2 + $0x21]] }
  0x4c   :  { %s1398_s24 = sld [smem:[#allocation2 + $0x2c]] }
  0x4d   :  { %s1400_s25 = sld [smem:[#allocation2 + $0x23]] }
  0x4e   :  { %2771 = sst [smem:[#allocation23_spill]] %s1390_s21 }
  0x4f   :  { %2772 = sst [smem:[#allocation24_spill]] %s1392_s2 }
  0x50   :  { %2773 = sst [smem:[#allocation25_spill]] %s1394_s22 }
  0x51   :  { %2774 = sst [smem:[#allocation26_spill]] %s1396_s23 }
  0x52   :  { %2775 = sst [smem:[#allocation27_spill]] %s1398_s24 }
  0x53   :  { %2776 = sst [smem:[#allocation28_spill]] %s1400_s25 }
  0x54   :  { %s1402_s26 = sld [smem:[#allocation2 + $0x2d]] }
  0x55   :  { %s1404_s3 = sld [smem:[#allocation2 + $0x25]] }
  0x56   :  { %s1406_s4 = sld [smem:[#allocation2 + $0x2e]] }
  0x57   :  { %s1408_s27 = sld [smem:[#allocation2 + $0x2f]] }
  0x58   :  { %s1410_s5 = sld [smem:[#allocation2 + $0x30]] }
  0x59   :  { %s1412_s21 = sld [smem:[#allocation2 + $0x31]] }
  0x5a   :  { %2777 = sst [smem:[#allocation29_spill]] %s1402_s26 }
  0x5b   :  { %2778 = sst [smem:[#allocation30_spill]] %s1404_s3 }
  0x5c   :  { %2779 = sst [smem:[#allocation31_spill]] %s1406_s4 }
  0x5d   :  { %2780 = sst [smem:[#allocation32_spill]] %s1408_s27 }
  0x5e   :  { %2781 = sst [smem:[#allocation33_spill]] %s1410_s5 }
  0x5f   :  { %2782 = sst [smem:[#allocation34_spill]] %s1412_s21 }
  0x60   :  { %s1414_s2 = sld [smem:[#allocation2 + $0x32]] }
  0x61   :  { %s1416_s22 = sld [smem:[#allocation2 + $0x33]] }
  0x62   :  { %s1418_s23 = sld [smem:[#allocation2 + $0x34]] }
  0x63   :  { %s1420_s24 = sld [smem:[#allocation2 + $0x35]] }
  0x64   :  { %s1422_s25 = sld [smem:[#allocation2 + $0x36]] }
  0x65   :  { %s1424_s26 = sld [smem:[#allocation2 + $0x37]] }
  0x66   :  { %2783 = sst [smem:[#allocation35_spill]] %s1414_s2 }
  0x67   :  { %2784 = sst [smem:[#allocation36_spill]] %s1416_s22 }
  0x68   :  { %2785 = sst [smem:[#allocation37_spill]] %s1418_s23 }
  0x69   :  { %2786 = sst [smem:[#allocation38_spill]] %s1420_s24 }
  0x6a   :  { %2787 = sst [smem:[#allocation39_spill]] %s1422_s25 }
  0x6b   :  { %2788 = sst [smem:[#allocation40_spill]] %s1424_s26 }
  0x6c   :  { %s1426_s3 = sld [smem:[#allocation2 + $0x80]] }
  0x6d   :  { %s1428_s4 = sld [smem:[#allocation2 + $0x89]] }
  0x6e   :  { %s1430_s27 = sld [smem:[#allocation2 + $0x38]] }
  0x6f   :  { %s1432_s5 = sld [smem:[#allocation2 + $0x39]] }
  0x70   :  { %s1434_s21 = sld [smem:[#allocation2 + $0x3a]] }
  0x71   :  { %s1436_s2 = sld [smem:[#allocation2 + $0x3b]] }
  0x72   :  { %2789 = sst [smem:[#allocation41_spill]] %s1426_s3 }
  0x73   :  { %2790 = sst [smem:[#allocation42_spill]] %s1428_s4 }
  0x74   :  { %2791 = sst [smem:[#allocation43_spill]] %s1430_s27 }
  0x75   :  { %2792 = sst [smem:[#allocation44_spill]] %s1432_s5 }
  0x76   :  { %2793 = sst [smem:[#allocation45_spill]] %s1434_s21 }
  0x77   :  { %2794 = sst [smem:[#allocation46_spill]] %s1436_s2 }
  0x78   :  { %s1438_s22 = sld [smem:[#allocation2 + $0x3c]] }
  0x79   :  { %s1440_s23 = sld [smem:[#allocation2 + $0x3d]] }
  0x7a   :  { %s1442_s24 = sld [smem:[#allocation2 + $0x3e]] }
  0x7b   :  { %s1444_s25 = sld [smem:[#allocation2 + $0x3f]] }
  0x7c   :  { %s1446_s26 = sld [smem:[#allocation2 + $0x40]] }
  0x7d   :  { %s1448_s3 = sld [smem:[#allocation2 + $0x81]] }
  0x7e   :  { %2795 = sst [smem:[#allocation47_spill]] %s1438_s22 }
  0x7f   :  { %2796 = sst [smem:[#allocation48_spill]] %s1440_s23 }
  0x80   :  { %2797 = sst [smem:[#allocation49_spill]] %s1442_s24 }
  0x81   :  { %2798 = sst [smem:[#allocation50_spill]] %s1444_s25 }
  0x82   :  { %2799 = sst [smem:[#allocation51_spill]] %s1446_s26 }
  0x83   :  { %2800 = sst [smem:[#allocation52_spill]] %s1448_s3 }
  0x84   :  { %s1450_s4 = sld [smem:[#allocation2 + $0x8a]] }
  0x85   :  { %s1452_s27 = sld [smem:[#allocation2 + $0x41]] }
  0x86   :  { %s1454_s5 = sld [smem:[#allocation2 + $0x42]] }
  0x87   :  { %s1456_s21 = sld [smem:[#allocation2 + $0x43]] }
  0x88   :  { %s1458_s2 = sld [smem:[#allocation2 + $0x44]] }
  0x89   :  { %s1460_s22 = sld [smem:[#allocation2 + $0x45]] }
  0x8a   :  { %2801 = sst [smem:[#allocation53_spill]] %s1450_s4 }
  0x8b   :  { %2802 = sst [smem:[#allocation54_spill]] %s1452_s27 }
  0x8c   :  { %2803 = sst [smem:[#allocation55_spill]] %s1454_s5 }
  0x8d   :  { %2804 = sst [smem:[#allocation56_spill]] %s1456_s21  ;;  %v1522_v20 = vpop.permute.xlu1 %150  ;;  %v1524_v21 = vpop.permute.xlu0 %114 }
  0x8e   :  { %2805 = sst [smem:[#allocation57_spill]] %s1458_s2  ;;  %v120_v13 = vadd.f32 %v1524_v21, %v1312_v62  ;;  %v156_v62 = vadd.f32 %v1522_v20, %v1310_v61 }
  0x8f   :  { %2806 = sst [smem:[#allocation58_spill]] %s1460_s22 }
  0x90   :  { %s1462_s23 = sld [smem:[#allocation2 + $0x46]] }
  0x91   :  { %s1464_s24 = sld [smem:[#allocation2 + $0x47]]  ;;  %v1534_v22 = vpop.permute.xlu1 %152  ;;  %v1536_v23 = vpop.permute.xlu0 %116 }
  0x92   :  { %s1466_s25 = sld [smem:[#allocation2 + $0x48]]  ;;  %v121_v12 = vadd.f32 %v1536_v23, %v1316_v0  ;;  %v157_v17 = vadd.f32 %v1534_v22, %v1314_v63 }
  0x93   :  { %s1468_s26 = sld [smem:[#allocation2 + $0x49]] }
  0x94   :  { %s1470_s3 = sld [smem:[#allocation2 + $0x82]] }
  0x95   :  { %s1472_s4 = sld [smem:[#allocation2 + $0x8b]]  ;;  %v1548_v26 = vpop.permute.xlu1 %128  ;;  %v1550_v27 = vpop.permute.xlu0 %126 }
  0x96   :  { %2807 = sst [smem:[#allocation59_spill]] %s1462_s23  ;;  %v133_v0 = vadd.f32 %v1548_v26, %v121_v12  ;;  %v132_v21 = vadd.f32 %v1550_v27, %v120_v13 }
  0x97   :  { %2808 = sst [smem:[#allocation60_spill]] %s1464_s24 }
  0x98   :  { %2809 = sst [smem:[#allocation61_spill]] %s1466_s25 }
  0x99   :  { %2810 = sst [smem:[#allocation62_spill]] %s1468_s26  ;;  %v1568_v33 = vpop.permute.xlu1 %164  ;;  %v1570_v3 = vpop.permute.xlu0 %162 }
  0x9a   :  { %2811 = sst [smem:[#allocation63_spill]] %s1470_s3  ;;  %v169_v63 = vadd.f32 %v1568_v33, %v157_v17  ;;  %v168_v27 = vadd.f32 %v1570_v3, %v156_v62 }
  0x9b   :  { %2812 = sst [smem:[#allocation64_spill]] %s1472_s4 }
  0x9c   :  { %s1474_s27 = sld [smem:[#allocation2 + $0x4a]] }
  0x9d   :  { %s1476_s5 = sld [smem:[#allocation2 + $0x4b]]  ;;  %v1596_v50 = vpop.permute.xlu1 %140  ;;  %v1598_v51 = vpop.permute.xlu0 %138 }
  0x9e   :  { %s1478_s21 = sld [smem:[#allocation2 + $0x4c]]  ;;  %v145_v61 = vadd.f32 %v1596_v50, %v133_v0  ;;  %v144_v20 = vadd.f32 %v1598_v51, %v132_v21 }
  0x9f   :  { %s1480_s2 = sld [smem:[#allocation2 + $0x4d]] }
  0xa0   :  { %s1482_s22 = sld [smem:[#allocation2 + $0x4e]] }
  0xa1   :  { %s1484_s23 = sld [smem:[#allocation2 + $0x4f]]  ;;  %v1624_v6 = vpop.permute.xlu1 %176  ;;  %v1626_v9 = vpop.permute.xlu0 %174 }
  0xa2   :  { %2813 = sst [smem:[#allocation65_spill]] %s1474_s27 }
  0xa3   :  { %2814 = sst [smem:[#allocation66_spill]] %s1476_s5 }
  0xa4   :  { %2815 = sst [smem:[#allocation67_spill]] %s1478_s21 }
  0xa5   :  { %2816 = sst [smem:[#allocation68_spill]] %s1480_s2  ;;  %v1652_v19 = vpop.permute.xlu1 %203  ;;  %v1654_v24 = vpop.permute.xlu0 %201 }
  0xa6   :  { %2817 = sst [smem:[#allocation69_spill]] %s1482_s22  ;;  %v208_v50 = vadd.f32 %v1652_v19, %v145_v61  ;;  %v207_v51 = vadd.f32 %v1654_v24, %v144_v20 }
  0xa7   :  { %2818 = sst [smem:[#allocation70_spill]] %s1484_s23 }
  0xa8   :  { %s1486_s24 = sld [smem:[#allocation2 + $0x50]] }
  0xa9   :  { %s1488_s25 = sld [smem:[#allocation2 + $0x51]]  ;;  %v1680_v4 = vpop.permute.xlu1 %239  ;;  %v1682_v14 = vpop.permute.xlu0 %237 }
  0xaa   :  { %s1490_s26 = sld [smem:[#allocation2 + $0x52]] }
  0xab   :  { %s1492_s3 = sld [smem:[#allocation2 + $0x83]] }
  0xac   :  { %s1494_s4 = sld [smem:[#allocation2 + $0x8c]] }
  0xad   :  { %s1496_s27 = sld [smem:[#allocation2 + $0x53]]  ;;  %v216_v11 = vpop.permute.xlu1 %215  ;;  %v214_v10 = vpop.permute.xlu0 %213 }
  0xae   :  { %2819 = sst [smem:[#allocation71_spill]] %s1486_s24  ;;  %v220_v19 = vadd.f32 %v216_v11, %v208_v50  ;;  %v219_v24 = vadd.f32 %v214_v10, %v207_v51  ;;  %v181_v11 = vadd.f32 %v1624_v6, %v169_v63  ;;  %v180_v10 = vadd.f32 %v1626_v9, %v168_v27 }
  0xaf   :  { %2820 = sst [smem:[#allocation72_spill]] %s1488_s25 }
  0xb0   :  { %2821 = sst [smem:[#allocation73_spill]] %s1490_s26  ;;  %v244_v27 = vadd.f32 %v1680_v4, %v181_v11 }
  0xb1   :  { %2822 = sst [smem:[#allocation74_spill]] %s1492_s3  ;;  %v252_v12 = vpop.permute.xlu1 %251  ;;  %v250_v13 = vpop.permute.xlu0 %249 }
  0xb2   :  { %2823 = sst [smem:[#allocation75_spill]] %s1494_s4 }
  0xb3   :  { %2824 = sst [smem:[#allocation76_spill]] %s1496_s27 }
  0xb4   :  { %s1498_s5 = sld [smem:[#allocation2 + $0x54]] }
  0xb5   :  { %s1500_s21 = sld [smem:[#allocation2 + $0x55]]  ;;  %v228_v21 = vpop.permute.xlu1 %227  ;;  %v226_v0 = vpop.permute.xlu0 %225 }
  0xb6   :  { %s1502_s2 = sld [smem:[#allocation2 + $0x56]]  ;;  %v232_v50 = vadd.f32 %v228_v21, %v220_v19  ;;  %v231_v51 = vadd.f32 %v226_v0, %v219_v24  ;;  %v243_v0 = vadd.f32 %v1682_v14, %v180_v10  ;;  %v256_v10 = vadd.f32 %v252_v12, %v244_v27 }
  0xb7   :  { %s1504_s22 = sld [smem:[#allocation2 + $0x57]] }
  0xb8   :  { %s1506_s23 = sld [smem:[#allocation2 + $0x58]]  ;;  %v275_v62 = vadd.f32 %v1558_v28, %v232_v50  ;;  %v1770_v6 = vadd.f32 %v1558_v28, %v231_v51  ;;  %v255_v24 = vadd.f32 %v250_v13, %v243_v0 }
  0xb9   :  { %s1508_s24 = sld [smem:[#allocation2 + $0x59]]  ;;  %v264_v14 = vpop.permute.xlu1 %263  ;;  %v262_v11 = vpop.permute.xlu0 %261 }
  0xba   :  { %2825 = sst [smem:[#allocation77_spill]] %s1498_s5  ;;  %v281_v50 = vmul.f32 %v279_v29, %v275_v62  ;;  %v295_v63 = vmul.f32 %v293_v30, %v275_v62  ;;  %v309_v33 = vmul.f32 %v307_v31, %v275_v62  ;;  %v323_v4 = vmul.f32 %v321_v32, %v275_v62 }
  0xbb   :  { %2826 = sst [smem:[#allocation78_spill]] %s1500_s21  ;;  %v337_v9 = vmul.f32 %v335_v34, %v275_v62  ;;  %v351_v12 = vmul.f32 %v349_v35, %v275_v62  ;;  %v268_v13 = vadd.f32 %v264_v14, %v256_v10  ;;  %v267_v27 = vadd.f32 %v262_v11, %v255_v24 }
  0xbc   :  { %2827 = sst [smem:[#allocation79_spill]] %s1502_s2  ;;  %v365_v0 = vmul.f32 %v363_v36, %v275_v62  ;;  %v379_v21 = vmul.f32 %v377_v37, %v275_v62  ;;  %v393_v19 = vmul.f32 %v391_v38, %v275_v62  ;;  %v1809_v51 = vmul.f32 %v279_v29, %v1770_v6 }
  0xbd   :  { %2828 = sst [smem:[#allocation80_spill]] %s1504_s22  ;;  %v1814_v14 = vmul.f32 %v293_v30, %v1770_v6  ;;  %v1819_v24 = vmul.f32 %v307_v31, %v1770_v6  ;;  %v277_v11 = vadd.f32 %v1558_v28, %v268_v13  ;;  %v1823_v10 = vadd.f32 %v1558_v28, %v267_v27 }
  0xbe   :  { %2829 = sst [smem:[#allocation81_spill]] %s1506_s23  ;;  %v1828_v62 = vmul.f32 %v321_v32, %v1770_v6  ;;  %v1833_v29 = vmul.f32 %v335_v34, %v1770_v6  ;;  %v1838_v30 = vmul.f32 %v349_v35, %v1770_v6  ;;  %v1843_v31 = vmul.f32 %v363_v36, %v1770_v6 }
  0xbf   :  { %2830 = sst [smem:[#allocation82_spill]] %s1508_s24  ;;  %v285_v13 = vmul.f32 %v2717_v39, %v277_v11  ;;  %v299_v28 = vmul.f32 %v2718_v40, %v277_v11  ;;  %v313_v32 = vmul.f32 %v2719_v41, %v277_v11  ;;  %v327_v34 = vmul.f32 %v2720_v45, %v277_v11 }
  0xc0   :  { %s1510_s25 = sld [smem:[#allocation2 + $0x5a]]  ;;  %v341_v27 = vmul.f32 %v2721_v47, %v277_v11 }
  0xc1   :  { %s1512_s26 = sld [smem:[#allocation2 + $0x5b]]  ;;  %v287_v40 = vadd.f32 %v285_v13, %v281_v50  ;;  %v301_v3 = vadd.f32 %v299_v28, %v295_v63  ;;  %v315_v41 = vadd.f32 %v313_v32, %v309_v33  ;;  %v329_v45 = vadd.f32 %v327_v34, %v323_v4 }
  0xc2   :  { %s1514_s4 = sld [smem:[#allocation2 + $0x84]]  ;;  %v343_v61 = vadd.f32 %v341_v27, %v337_v9 }
  0xc3   :  { %s1516_s27 = sld [smem:[#allocation2 + $0x8d]]  ;;  %v1867_v50 = vadd.f32 %v303_v43, %v301_v3  ;;  %v1871_v63 = vadd.f32 %v2743_v44, %v315_v41  ;;  %v1875_v33 = vadd.f32 %v2740_v46, %v329_v45  ;;  %v1896_v45 = vmul.f32 %v377_v37, %v1770_v6 }
  0xc4   :  { %s1518_s5 = sld [smem:[#allocation2 + $0x5c]] }
  0xc5   :  { %s1520_s21 = sld [smem:[#allocation2 + $0x5d]] }
  0xc6   :  { %2831 = sst [smem:[#allocation83_spill]] %s1510_s25 }
  0xc7   :  { %2832 = sst [smem:[#allocation84_spill]] %s1512_s26 }
  0xc8   :  { %2833 = sst [smem:[#allocation85_spill]] %s1514_s4 }
  0xc9   :  { %2834 = sst [smem:[#allocation86_spill]] %s1516_s27 }
  0xca   :  { %2835 = sst [smem:[#allocation87_spill]] %s1518_s5 }
  0xcb   :  { %2836 = sst [smem:[#allocation88_spill]] %s1520_s21 }
  0xcc   :  { %s1526_s23 = sld [smem:[#allocation2 + $0x5e]] }
  0xcd   :  { %s1528_s24 = sld [smem:[#allocation2 + $0x5f]] }
  0xce   :  { %s1530_s25 = sld [smem:[#allocation2 + $0x60]] }
  0xcf   :  { %s1532_s26 = sld [smem:[#allocation2 + $0x61]] }
  0xd0   :  { %s1538_s21 = sld [smem:[#allocation2 + $0x62]] }
  0xd1   :  { %s1540_s5 = sld [smem:[#allocation2 + $0x63]] }
  0xd2   :  { %2837 = sst [smem:[#allocation89_spill]] %s1526_s23 }
  0xd3   :  { %2838 = sst [smem:[#allocation90_spill]] %s1528_s24 }
  0xd4   :  { %2839 = sst [smem:[#allocation91_spill]] %s1530_s25 }
  0xd5   :  { %2840 = sst [smem:[#allocation92_spill]] %s1532_s26 }
  0xd6   :  { %2841 = sst [smem:[#allocation93_spill]] %s1538_s21 }
  0xd7   :  { %2842 = sst [smem:[#allocation94_spill]] %s1540_s5 }
  0xd8   :  { %s1542_s27 = sld [smem:[#allocation2 + $0x64]] }
  0xd9   :  { %s1546_s25 = sld [smem:[#allocation2 + $0x85]] }
  0xda   :  { %s1552_s26 = sld [smem:[#allocation2 + $0x8e]] }
  0xdb   :  { %s1554_s21 = sld [smem:[#allocation2 + $0x65]] }
  0xdc   :  { %s1560_s28 = sld [smem:[#allocation2 + $0x66]] }
  0xdd   :  { %s1566_s29 = sld [smem:[#allocation2 + $0x67]] }
  0xde   :  { %2843 = sst [smem:[#allocation95_spill]] %s1542_s27 }
  0xdf   :  { %2844 = sst [smem:[#allocation96_spill]] %s1546_s25 }
  0xe0   :  { %2845 = sst [smem:[#allocation97_spill]] %s1552_s26 }
  0xe1   :  { %2846 = sst [smem:[#allocation98_spill]] %s1554_s21 }
  0xe2   :  { %2847 = sst [smem:[#allocation99_spill]] %s1560_s28 }
  0xe3   :  { %2848 = sst [smem:[#allocation100_spill]] %s1566_s29 }
  0xe4   :  { %s2849_s28 = sld [smem:[#allocation23_spill]] }
  0xe5   :  { %s2850_s30 = sld [smem:[#allocation24_spill]] }
  0xe6   :  { %s1576_s6 = sld [smem:[#allocation2 + $0x68]] }
  0xe7   :  { %s2852_s8 = sld [smem:[#allocation25_spill]] }
  0xe8   :  { %s2853_s7 = sld [smem:[#allocation26_spill]] }
  0xe9   :  { %s2854_s29 = sld [smem:[#allocation27_spill]] }
  0xea   :  { %s1582_s21 = sld [smem:[#allocation2 + $0x69]]  ;;  %v2736_v48 = vstv %s2849_s28 }
  0xeb   :  { %s2856_s26 = sld [smem:[#allocation28_spill]]  ;;  %v2722_v49 = vstv %s2850_s30  ;;  %v1879_v9 = vadd.f32 %v2736_v48, %v343_v61 }
  0xec   :  { %2851 = sst [smem:[#allocation101_spill]] %s1576_s6  ;;  %v355_v35 = vmul.f32 %v2722_v49, %v277_v11 }
  0xed   :  { %s2857_s9 = sld [smem:[#allocation29_spill]]  ;;  %v2734_v52 = vstv %s2852_s8 }
  0xee   :  { %s2858_s10 = sld [smem:[#allocation30_spill]]  ;;  %v2723_v53 = vstv %s2853_s7  ;;  %v357_v47 = vadd.f32 %v355_v35, %v351_v12 }
  0xef   :  { %s1588_s12 = sld [smem:[#allocation2 + $0x6a]]  ;;  %v2731_v54 = vstv %s2854_s29  ;;  %v369_v36 = vmul.f32 %v2723_v53, %v277_v11  ;;  %v1863_v53 = vadd.f32 %v289_v42, %v287_v40 }
  0xf0   :  { %2855 = sst [smem:[#allocation102_spill]] %s1582_s21 }
  0xf1   :  { %s2861_s6 = sld [smem:[#allocation32_spill]]  ;;  %v381_v55 = vstv %s2856_s26  ;;  %v371_v49 = vadd.f32 %v369_v36, %v365_v0 }
  0xf2   :  { %s2862_s1 = sld [smem:[#allocation33_spill]]  ;;  %v383_v39 = vmul.f32 %v381_v55, %v277_v11 }
  0xf3   :  { %s2863_s13 = sld [smem:[#allocation34_spill]]  ;;  %v2730_v56 = vstv %s2857_s9  ;;  %v1887_v40 = vadd.f32 %v2731_v54, %v371_v49 }
  0xf4   :  { %s2864_s14 = sld [smem:[#allocation35_spill]]  ;;  %v2741_v57 = vstv %s2858_s10  ;;  %v385_v20 = vadd.f32 %v383_v39, %v379_v21  ;;  %v1883_v39 = vadd.f32 %v2734_v52, %v357_v47 }
  0xf5   :  { %2860 = sst [smem:[#allocation103_spill]] %s1588_s12  ;;  %v397_v61 = vmul.f32 %v2741_v57, %v277_v11 }
  0xf6   :  { %s1594_s0 = sld [smem:[#allocation2 + $0x6b]]  ;;  %v1891_v41 = vadd.f32 %v2730_v56, %v385_v20  ;;  %v1909_v20 = vmul.f32 %v391_v38, %v1770_v6 }
  0xf7   :  { %s2866_s21 = sld [smem:[#allocation36_spill]]  ;;  %v2739_v59 = vstv %s2861_s6  ;;  %v399_v4 = vadd.f32 %v397_v61, %v393_v19 }
  0xf8   :  { %s2867_s17 = sld [smem:[#allocation37_spill]]  ;;  %v2737_v60 = vstv %s2862_s1  ;;  %v407_v47 = vmul.f32 %v2739_v59, %v1863_v53 }
  0xf9   :  { %s1604_s20 = sld [smem:[#allocation2 + $0x6c]]  ;;  %v2735_v1 = vstv %s2863_s13  ;;  %v411_v49 = vmul.f32 %v2737_v60, %v1867_v50 }
  0xfa   :  { %s2874_s18 = sld [smem:[#allocation43_spill]]  ;;  %v2733_v2 = vstv %s2864_s14  ;;  %v417_v3 = vmul.f32 %v2735_v1, %v1871_v63 }
  0xfb   :  { %s1616_s26 = sld [smem:[#allocation2 + $0x86]]  ;;  %v423_v37 = vmul.f32 %v2733_v2, %v1875_v33  ;;  %v413_v12 = vadd.f32 %v411_v49, %v407_v47 }
  0xfc   :  { %2865 = sst [smem:[#allocation104_spill]] %s1594_s0 }
  0xfd   :  { %s1610_s0 = sld [smem:[#allocation2 + $0x6d]]  ;;  %v2729_v5 = vstv %s2866_s21  ;;  %v419_v61 = vadd.f32 %v417_v3, %v413_v12 }
  0xfe   :  { %v2728_v7 = vstv %s2867_s17  ;;  %s1622_s9 = sld [smem:[#allocation2 + $0x8f]]  ;;  %v429_v21 = vmul.f32 %v2729_v5, %v1879_v9 }
  0xff   :  { %2871 = sst [smem:[#allocation105_spill]] %s1604_s20  ;;  %v435_v0 = vmul.f32 %v2728_v7, %v1883_v39  ;;  %v425_v12 = vadd.f32 %v423_v37, %v419_v61 }
 0x100   :  { %v2732_v15 = vstv %s2874_s18  ;;  %s1632_s16 = sld [smem:[#allocation2 + $0x6e]] }
 0x101   :  { %2880 = sst [smem:[#allocation107_spill]] %s1616_s26  ;;  %v469_v38 = vmul.f32 %v2732_v15, %v1863_v53  ;;  %v431_v61 = vadd.f32 %v429_v21, %v425_v12 }
 0x102   :  { %s1644_s12 = sld [smem:[#allocation2 + $0x70]] }
 0x103   :  { %2875 = sst [smem:[#allocation106_spill]] %s1610_s0  ;;  %v437_v12 = vadd.f32 %v435_v0, %v431_v61 }
 0x104   :  { %2885 = sst [smem:[#allocation108_spill]] %s1622_s9 }
 0x105   :  { %s1638_s9 = sld [smem:[#allocation2 + $0x6f]] }
 0x106   :  { %2891 = sst [smem:[#allocation109_spill]] %s1632_s16 }
 0x107   :  { %s2902_s7 = sld [smem:[#allocation65_spill]] }
 0x108   :  { %2900 = sst [smem:[#allocation111_spill]] %s1644_s12 }
 0x109   :  { %s2903_s29 = sld [smem:[#allocation66_spill]] }
 0x10a   :  { %s2904_s20 = sld [smem:[#allocation67_spill]] }
 0x10b   :  { %2895 = sst [smem:[#allocation110_spill]] %s1638_s9 }
 0x10c   :  { %s1650_s8 = sld [smem:[#allocation2 + $0x71]] }
 0x10d   :  { %s1660_s10 = sld [smem:[#allocation2 + $0x72]] }
 0x10e   :  { %s1666_s21 = sld [smem:[#allocation2 + $0x73]] }
 0x10f   :  { %s1672_s26 = sld [smem:[#allocation2 + $0x74]] }
 0x110   :  { %s1678_s28 = sld [smem:[#allocation2 + $0x75]] }
 0x111   :  { %s1688_s6 = sld [smem:[#allocation2 + $0x76]] }
 0x112   :  { %2905 = sst [smem:[#allocation66_spill]] %s1650_s8 }
 0x113   :  { %2911 = sst [smem:[#allocation112_spill]] %s1660_s10 }
 0x114   :  { %2914 = sst [smem:[#allocation113_spill]] %s1666_s21 }
 0x115   :  { %2918 = sst [smem:[#allocation114_spill]] %s1672_s26 }
 0x116   :  { %2922 = sst [smem:[#allocation115_spill]] %s1678_s28 }
 0x117   :  { %2925 = sst [smem:[#allocation116_spill]] %s1688_s6 }
 0x118   :  { %s2926_s11 = sld [smem:[#allocation87_spill]] }
 0x119   :  { %s2927_s14 = sld [smem:[#allocation88_spill]] }
 0x11a   :  { %s1694_s0 = sld [smem:[#allocation2 + $0x87]] }
 0x11b   :  { %s1700_s3 = sld [smem:[#allocation2 + $0x90]] }
 0x11c   :  { %s2930_s13 = sld [smem:[#allocation91_spill]] }
 0x11d   :  { %s2931_s2 = sld [smem:[#allocation92_spill]] }
 0x11e   :  { %s1708_s15 = sld [smem:[#allocation2 + $0x77]]  ;;  %v723_v25 = vstv %s2926_s11 }
 0x11f   :  { %v727_v16 = vstv %s2927_s14  ;;  %s1714_s1 = sld [smem:[#allocation2 + $0x78]] }
 0x120   :  { %2928 = sst [smem:[#allocation117_spill]] %s1694_s0 }
 0x121   :  { %2929 = sst [smem:[#allocation118_spill]] %s1700_s3 }
 0x122   :  { %s2935_s4 = sld [smem:[#allocation98_spill]]  ;;  %v745_v23 = vstv %s2930_s13 }
 0x123   :  { %s2936_s16 = sld [smem:[#allocation99_spill]]  ;;  %v751_v58 = vstv %s2931_s2 }
 0x124   :  { %s1721_s18 = sld [smem:[#allocation2 + $0x79]] }
 0x125   :  { %2933 = sst [smem:[#allocation119_spill]] %s1714_s1 }
 0x126   :  { %s2939_s24 = sld [smem:[#allocation101_spill]] }
 0x127   :  { %s1728_s14 = sld [smem:[#allocation2 + $0x7a]] }
 0x128   :  { %s2942_s13 = sld [smem:[#allocation103_spill]]  ;;  %v787_v22 = vstv %s2935_s4 }
 0x129   :  { %s1734_s30 = sld [smem:[#allocation2 + $0x7b]]  ;;  %v791_v18 = vstv %s2936_s16 }
 0x12a   :  { %2937 = sst [smem:[#allocation98_spill]] %s1721_s18 }
 0x12b   :  { %s2944_s17 = sld [smem:[#allocation104_spill]] }
 0x12c   :  { %s2945_s22 = sld [smem:[#allocation105_spill]] }
 0x12d   :  { %2940 = sst [smem:[#allocation120_spill]] %s1728_s14 }
 0x12e   :  { %s1740_s2 = sld [smem:[#allocation2 + $0x7c]]  ;;  %v815_v26 = vstv %s2942_s13 }
 0x12f   :  { %2943 = sst [smem:[#allocation121_spill]] %s1734_s30 }
 0x130   :  { %s2950_s19 = sld [smem:[#allocation109_spill]] }
 0x131   :  { %s1746_s8 = sld [smem:[#allocation2 + $0x7d]]  ;;  %v821_v8 = vstv %s2944_s17 }
 0x132   :  { %s2952_s9 = sld [smem:[#allocation110_spill]] }
 0x133   :  { %s1752_s23 = sld [smem:[#allocation2 + $0x7e]] }
 0x134   :  { %2947 = sst [smem:[#allocation122_spill]] %s1740_s2 }
 0x135   :  { %s1756_s11 = sld [smem:[#allocation2 + $0x7f]] }
 0x136   :  { %v851_v17 = vstv %s2950_s19  ;;  %s2984_s2 = sld [smem:[#allocation34_spill]] }
 0x137   :  { %2951 = sst [smem:[#allocation109_spill]] %s1746_s8 }
 0x138   :  { %s2989_s6 = sld [smem:[#allocation38_spill]] }
 0x139   :  { %2953 = sst [smem:[#allocation123_spill]] %s1752_s23 }
 0x13a   :  { %s2990_s21 = sld [smem:[#allocation39_spill]] }
 0x13b   :  { %2955 = sst [smem:[#allocation124_spill]] %s1756_s11 }
 0x13c   :  { %s2981_s11 = sld [smem:[#allocation30_spill]] }
 0x13d   :  { %s2991_s16 = sld [smem:[#allocation44_spill]] }
 0x13e   :  { %s2992_s25 = sld [smem:[#allocation45_spill]]  ;;  %v3001_v6 = vstv %s2989_s6 }
 0x13f   :  { %s2993_s12 = sld [smem:[#allocation31_spill]]  ;;  %v441_v11 = vmul.f32 %v3001_v6, %v1887_v40 }
 0x140   :  { %s2994_s28 = sld [smem:[#allocation46_spill]]  ;;  %v3003_v13 = vstv %s2990_s21 }
 0x141   :  { %s2995_s0 = sld [smem:[#allocation47_spill]]  ;;  %v447_v28 = vmul.f32 %v3003_v13, %v1891_v41  ;;  %v443_v61 = vadd.f32 %v441_v11, %v437_v12 }
 0x142   :  { %s2996_s26 = sld [smem:[#allocation48_spill]] }
 0x143   :  { %s2997_s27 = sld [smem:[#allocation54_spill]]  ;;  %v3004_v32 = vstv %s2991_s16 }
 0x144   :  { %s2998_s23 = sld [smem:[#allocation55_spill]]  ;;  %v473_v19 = vmul.f32 %v3004_v32, %v1867_v50  ;;  %v3006_v34 = vstv %s2992_s25 }
 0x145   :  { %s2999_s5 = sld [smem:[#allocation40_spill]]  ;;  %v479_v27 = vmul.f32 %v3006_v34, %v1871_v63  ;;  %v3007_v35 = vstv %s2993_s12 }
 0x146   :  { %s3000_s8 = sld [smem:[#allocation49_spill]]  ;;  %v1940_v36 = vadd.f32 %v3007_v35, %v399_v4  ;;  %v3009_v47 = vstv %s2994_s28  ;;  %v475_v7 = vadd.f32 %v473_v19, %v469_v38 }
 0x147   :  { %s3002_s30 = sld [smem:[#allocation50_spill]]  ;;  %v485_v49 = vmul.f32 %v3009_v47, %v1875_v33  ;;  %v3011_v6 = vstv %s2995_s0 }
 0x148   :  { %s3005_s14 = sld [smem:[#allocation51_spill]]  ;;  %v491_v13 = vmul.f32 %v3011_v6, %v1879_v9  ;;  %v3014_v32 = vstv %s2996_s26 }
 0x149   :  { %s3008_s3 = sld [smem:[#allocation56_spill]]  ;;  %v497_v5 = vmul.f32 %v3014_v32, %v1883_v39  ;;  %v3015_v34 = vstv %s2997_s27  ;;  %v481_v32 = vadd.f32 %v479_v27, %v475_v7 }
 0x14a   :  { %s3010_s6 = sld [smem:[#allocation57_spill]]  ;;  %v533_v56 = vmul.f32 %v3015_v34, %v1863_v53  ;;  %v3016_v4 = vstv %s2998_s23 }
 0x14b   :  { %s3012_s21 = sld [smem:[#allocation58_spill]]  ;;  %v537_v3 = vmul.f32 %v3016_v4, %v1867_v50  ;;  %v3018_v35 = vstv %s2999_s5  ;;  %v487_v27 = vadd.f32 %v485_v49, %v481_v32 }
 0x14c   :  { %s3013_s18 = sld [smem:[#allocation59_spill]]  ;;  %v453_v47 = vmul.f32 %v3018_v35, %v1940_v36  ;;  %v3019_v54 = vstv %s3000_s8 }
 0x14d   :  { %s3017_s12 = sld [smem:[#allocation60_spill]]  ;;  %v503_v6 = vmul.f32 %v3019_v54, %v1887_v40  ;;  %v3021_v38 = vstv %s3002_s30  ;;  %v539_v2 = vadd.f32 %v537_v3, %v533_v56 }
 0x14e   :  { %s3020_s0 = sld [smem:[#allocation61_spill]]  ;;  %v509_v19 = vmul.f32 %v3021_v38, %v1891_v41  ;;  %v3023_v34 = vstv %s3005_s14 }
 0x14f   :  { %s3022_s26 = sld [smem:[#allocation62_spill]]  ;;  %v515_v15 = vmul.f32 %v3023_v34, %v1940_v36  ;;  %v3024_v4 = vstv %s3008_s3 }
 0x150   :  { %v543_v37 = vmul.f32 %v3024_v4, %v1871_v63  ;;  %s3025_s5 = sld [smem:[#allocation68_spill]]  ;;  %v3026_v35 = vstv %s3010_s6  ;;  %v3032_v4 = vstv %s2902_s7 }
 0x151   :  { %v549_v52 = vmul.f32 %v3026_v35, %v1875_v33  ;;  %v3027_v54 = vstv %s3012_s21  ;;  %s3029_s30 = sld [smem:[#allocation69_spill]]  ;;  %v597_v21 = vmul.f32 %v3032_v4, %v1863_v53 }
 0x152   :  { %v555_v1 = vmul.f32 %v3027_v54, %v1879_v9  ;;  %v3028_v38 = vstv %s3013_s18  ;;  %s3030_s8 = sld [smem:[#allocation70_spill]]  ;;  %v545_v34 = vadd.f32 %v543_v37, %v539_v2  ;;  %v493_v2 = vadd.f32 %v491_v13, %v487_v27 }
 0x153   :  { %v561_v7 = vmul.f32 %v3028_v38, %v1883_v39  ;;  %v3031_v56 = vstv %s3017_s12  ;;  %s3033_s14 = sld [smem:[#allocation71_spill]]  ;;  %v3037_v38 = vstv %s2903_s29  ;;  %v3040_v37 = vstv %s2904_s20 }
 0x154   :  { %v567_v3 = vmul.f32 %v3031_v56, %v1887_v40  ;;  %s3034_s3 = sld [smem:[#allocation76_spill]]  ;;  %v3035_v35 = vstv %s3020_s0  ;;  %v601_v49 = vmul.f32 %v3037_v38, %v1867_v50  ;;  %v551_v32 = vadd.f32 %v549_v52, %v545_v34 }
 0x155   :  { %v573_v48 = vmul.f32 %v3035_v35, %v1891_v41  ;;  %v3036_v54 = vstv %s3022_s26  ;;  %s3038_s18 = sld [smem:[#allocation72_spill]]  ;;  %v607_v56 = vmul.f32 %v3040_v37, %v1871_v63  ;;  %v499_v38 = vadd.f32 %v497_v5, %v493_v2 }
 0x156   :  { %v579_v60 = vmul.f32 %v3036_v54, %v1940_v36  ;;  %s3039_s21 = sld [smem:[#allocation77_spill]]  ;;  %v3041_v4 = vstv %s3025_s5  ;;  %v603_v35 = vadd.f32 %v601_v49, %v597_v21  ;;  %v557_v13 = vadd.f32 %v555_v1, %v551_v32 }
 0x157   :  { %s3042_s12 = sld [smem:[#allocation73_spill]]  ;;  %v613_v0 = vmul.f32 %v3041_v4, %v1875_v33  ;;  %v3044_v59 = vstv %s3029_s30  ;;  %v449_v4 = vadd.f32 %v447_v28, %v443_v61  ;;  %v505_v5 = vadd.f32 %v503_v6, %v499_v38 }
 0x158   :  { %s3043_s7 = sld [smem:[#allocation78_spill]]  ;;  %v619_v54 = vmul.f32 %v3044_v59, %v1879_v9  ;;  %v3045_v46 = vstv %s3030_s8  ;;  %v609_v11 = vadd.f32 %v607_v56, %v603_v35  ;;  %v563_v1 = vadd.f32 %v561_v7, %v557_v13 }
 0x159   :  { %v625_v57 = vmul.f32 %v3045_v46, %v1883_v39  ;;  %s3046_s26 = sld [smem:[#allocation79_spill]]  ;;  %v3047_v52 = vstv %s3033_s14  ;;  %v455_v28 = vadd.f32 %v453_v47, %v449_v4 }
 0x15a   :  { %v631_v27 = vmul.f32 %v3047_v52, %v1887_v40  ;;  %v3048_v34 = vstv %s3034_s3  ;;  %s3049_s0 = sld [smem:[#allocation80_spill]]  ;;  %v615_v61 = vadd.f32 %v613_v0, %v609_v11  ;;  %v729_v11 = vmul.f32 %v727_v16, %v1867_v50 }
 0x15b   :  { %v661_v37 = vmul.f32 %v3048_v34, %v1863_v53  ;;  %s3050_s5 = sld [smem:[#allocation81_spill]]  ;;  %v3052_v21 = vstv %s3038_s18 }
 0x15c   :  { %s3051_s20 = sld [smem:[#allocation41_spill]]  ;;  %v637_v59 = vmul.f32 %v3052_v21, %v1891_v41  ;;  %v3053_v12 = vstv %s3039_s21  ;;  %v511_v21 = vadd.f32 %v509_v19, %v505_v5  ;;  %v621_v44 = vadd.f32 %v619_v54, %v615_v61 }
 0x15d   :  { %v665_v46 = vmul.f32 %v3053_v12, %v1867_v50  ;;  %s3054_s8 = sld [smem:[#allocation82_spill]]  ;;  %v3055_v49 = vstv %s3042_s12  ;;  %v569_v12 = vadd.f32 %v567_v3, %v563_v1  ;;  %v725_v3 = vmul.f32 %v723_v25, %v1863_v53 }
 0x15e   :  { %v643_v2 = vmul.f32 %v3055_v49, %v1940_v36  ;;  %v3056_v32 = vstv %s3043_s7  ;;  %s3060_s18 = sld [smem:[#allocation83_spill]]  ;;  %v517_v4 = vadd.f32 %v515_v15, %v511_v21  ;;  %v627_v5 = vadd.f32 %v625_v57, %v621_v44 }
 0x15f   :  { %v671_v52 = vmul.f32 %v3056_v32, %v1871_v63  ;;  %v667_v56 = vadd.f32 %v665_v46, %v661_v37  ;;  %v3059_v35 = vstv %s3046_s26  ;;  %s3061_s21 = sld [smem:[#allocation52_spill]]  ;;  %v575_v19 = vadd.f32 %v573_v48, %v569_v12 }
 0x160   :  { %v677_v34 = vmul.f32 %v3059_v35, %v1875_v33  ;;  %v3062_v6 = vstv %s3049_s0  ;;  %s3065_s12 = sld [smem:[#allocation89_spill]]  ;;  %v731_v48 = vadd.f32 %v729_v11, %v725_v3  ;;  %v633_v21 = vadd.f32 %v631_v27, %v627_v5 }
 0x161   :  { %v683_v7 = vmul.f32 %v3062_v6, %v1879_v9  ;;  %v3063_v38 = vstv %s3050_s5  ;;  %v673_v47 = vadd.f32 %v671_v52, %v667_v56  ;;  %s3067_s7 = sld [smem:[#allocation84_spill]]  ;;  %v581_v15 = vadd.f32 %v579_v60, %v575_v19 }
 0x162   :  { %v689_v13 = vmul.f32 %v3063_v38, %v1883_v39  ;;  %v3064_v49 = vstv %s3051_s20  ;;  %s3068_s26 = sld [smem:[#allocation90_spill]]  ;;  %v753_v19 = vmul.f32 %v751_v58, %v1883_v39 }
 0x163   :  { %v459_v32 = vadd.f32 %v3064_v49, %v455_v28  ;;  %v3066_v0 = vstv %s3054_s8  ;;  %s3069_s30 = sld [smem:[#allocation42_spill]]  ;;  %v679_v1 = vadd.f32 %v677_v34, %v673_v47 }
 0x164   :  { %v695_v37 = vmul.f32 %v3066_v0, %v1887_v40  ;;  %s3070_s5 = sld [smem:[#allocation63_spill]]  ;;  %v3071_v54 = vstv %s3060_s18 }
 0x165   :  { %v461_v46 = vmax.f32 %v459_v32, 0.0  ;;  %v701_v52 = vmul.f32 %v3071_v54, %v1891_v41  ;;  %v3073_v28 = vstv %s3061_s21  ;;  %s3075_s20 = sld [smem:[#allocation53_spill]]  ;;  %v685_v12 = vadd.f32 %v683_v7, %v679_v1 }
 0x166   :  { %v521_v61 = vadd.f32 %v3073_v28, %v517_v4  ;;  %v3076_v56 = vstv %s3065_s12  ;;  %s3077_s14 = sld [smem:[#allocation93_spill]]  ;;  %v639_v4 = vadd.f32 %v637_v59, %v633_v21  ;;  %v747_v7 = vmul.f32 %v745_v23, %v1879_v9 }
 0x167   :  { %v735_v35 = vmul.f32 %v3076_v56, %v1871_v63  ;;  %v3078_v6 = vstv %s3067_s7  ;;  %s3083_s3 = sld [smem:[#allocation64_spill]]  ;;  %v691_v27 = vadd.f32 %v689_v13, %v685_v12  ;;  %v789_v13 = vmul.f32 %v787_v22, %v1863_v53 }
 0x168   :  { %v707_v44 = vmul.f32 %v3078_v6, %v1940_v36  ;;  %v3079_v57 = vstv %s3068_s26  ;;  %v523_v32 = vmax.f32 %v521_v61, 0.0  ;;  %s3084_s12 = sld [smem:[#allocation94_spill]]  ;;  %v645_v28 = vadd.f32 %v643_v2, %v639_v4 }
 0x169   :  { %v741_v34 = vmul.f32 %v3079_v57, %v1875_v33  ;;  %v3080_v38 = vstv %s3069_s30  ;;  %v737_v0 = vadd.f32 %v735_v35, %v731_v48  ;;  %s3085_s21 = sld [smem:[#allocation74_spill]]  ;;  %v697_v59 = vadd.f32 %v695_v37, %v691_v27 }
 0x16a   :  { %v465_v49 = vmul.f32 %v3080_v38, %v461_v46  ;;  %v3082_v47 = vstv %s3070_s5  ;;  %s3087_s7 = sld [smem:[#allocation100_spill]]  ;;  %v793_v61 = vmul.f32 %v791_v18, %v1867_v50 }
 0x16b   :  { %v585_v60 = vadd.f32 %v3082_v47, %v581_v15  ;;  %v3086_v3 = vstv %s3075_s20  ;;  %v743_v46 = vadd.f32 %v741_v34, %v737_v0  ;;  %s3089_s26 = sld [smem:[#allocation95_spill]]  ;;  %v703_v37 = vadd.f32 %v701_v52, %v697_v59 }
 0x16c   :  { %v527_v11 = vmul.f32 %v3086_v3, %v523_v32  ;;  %v3088_v1 = vstv %s3077_s14  ;;  %s3090_s8 = sld [smem:[#allocation102_spill]]  ;;  %v795_v57 = vadd.f32 %v793_v61, %v789_v13  ;;  %v3098_v0 = vstv %s2939_s24 }
 0x16d   :  { %v587_v5 = vmax.f32 %v585_v60, 0.0  ;;  %v759_v54 = vmul.f32 %v3088_v1, %v1887_v40  ;;  %v3091_v48 = vstv %s3083_s3  ;;  %v749_v35 = vadd.f32 %v747_v7, %v743_v46  ;;  %s3094_s14 = sld [smem:[#allocation75_spill]] }
 0x16e   :  { %v529_v15 = vadd.f32 %v527_v11, %v465_v49  ;;  %v3092_v21 = vstv %s3084_s12  ;;  %s3095_s0 = sld [smem:[#allocation85_spill]]  ;;  %v805_v4 = vmul.f32 %v3098_v0, %v1875_v33  ;;  %v709_v7 = vadd.f32 %v707_v44, %v703_v37 }
 0x16f   :  { %v591_v56 = vmul.f32 %v3091_v48, %v587_v5  ;;  %v765_v12 = vmul.f32 %v3092_v21, %v1891_v41  ;;  %v3093_v6 = vstv %s3085_s21  ;;  %v755_v32 = vadd.f32 %v753_v19, %v749_v35  ;;  %s3099_s12 = sld [smem:[#allocation106_spill]] }
 0x170   :  { %v649_v2 = vadd.f32 %v3093_v6, %v645_v28  ;;  %v3096_v34 = vstv %s3087_s7  ;;  %s3100_s21 = sld [smem:[#allocation111_spill]]  ;;  %v817_v46 = vmul.f32 %v815_v26, %v1883_v39  ;;  %v823_v19 = vmul.f32 %v821_v8, %v1887_v40 }
 0x171   :  { %v799_v38 = vmul.f32 %v3096_v34, %v1871_v63  ;;  %v593_v49 = vadd.f32 %v591_v56, %v529_v15  ;;  %v3097_v47 = vstv %s3089_s26  ;;  %v761_v5 = vadd.f32 %v759_v54, %v755_v32  ;;  %s3102_s26 = sld [smem:[#allocation66_spill]] }
 0x172   :  { %v771_v60 = vmul.f32 %v3097_v47, %v1940_v36  ;;  %v651_v27 = vmax.f32 %v649_v2, 0.0  ;;  %v3101_v3 = vstv %s3090_s8  ;;  %s3103_s24 = sld [smem:[#allocation112_spill]]  ;;  %v853_v1 = vmul.f32 %v851_v17, %v1863_v53 }
 0x173   :  { %v801_v52 = vadd.f32 %v799_v38, %v795_v57  ;;  %v811_v11 = vmul.f32 %v3101_v3, %v1879_v9  ;;  %v3104_v28 = vstv %s3094_s14  ;;  %s3105_s7 = sld [smem:[#allocation113_spill]]  ;;  %v3108_v54 = vstv %s2952_s9 }
 0x174   :  { %v655_v59 = vmul.f32 %v3104_v28, %v651_v27  ;;  %v3106_v44 = vstv %s3095_s0  ;;  %s3107_s3 = sld [smem:[#allocation86_spill]]  ;;  %v857_v15 = vmul.f32 %v3108_v54, %v1867_v50  ;;  %v767_v48 = vadd.f32 %v765_v12, %v761_v5 }
 0x175   :  { %v713_v13 = vadd.f32 %v3106_v44, %v709_v7  ;;  %v807_v61 = vadd.f32 %v805_v4, %v801_v52  ;;  %s3109_s13 = sld [smem:[#allocation114_spill]]  ;;  %v3110_v56 = vstv %s2945_s22  ;;  %v3112_v21 = vstv %s3099_s12 }
 0x176   :  { %s3111_s17 = sld [smem:[#allocation96_spill]]  ;;  %v829_v35 = vmul.f32 %v3110_v56, %v1891_v41  ;;  %v835_v6 = vmul.f32 %v3112_v21, %v1940_v36  ;;  %v3114_v2 = vstv %s3100_s21  ;;  %v657_v57 = vadd.f32 %v655_v59, %v593_v49 }
 0x177   :  { %s3113_s8 = sld [smem:[#allocation115_spill]]  ;;  %v863_v37 = vmul.f32 %v3114_v2, %v1871_v63  ;;  %v715_v34 = vmax.f32 %v713_v13, 0.0  ;;  %v813_v38 = vadd.f32 %v811_v11, %v807_v61  ;;  %v859_v32 = vadd.f32 %v857_v15, %v853_v1 }
 0x178   :  { %s3115_s0 = sld [smem:[#allocation116_spill]]  ;;  %v773_v47 = vadd.f32 %v771_v60, %v767_v48  ;;  %v3116_v12 = vstv %s3102_s26  ;;  %v3117_v4 = vstv %s3103_s24  ;;  %v3128_v61 = vstv %s1708_s15 }
 0x179   :  { %v869_v0 = vmul.f32 %v3116_v12, %v1875_v33  ;;  %v875_v27 = vmul.f32 %v3117_v4, %v1879_v9  ;;  %v3118_v7 = vstv %s3105_s7  ;;  %s3119_s12 = sld [smem:[#allocation98_spill]]  ;;  %v819_v28 = vadd.f32 %v817_v46, %v813_v38 }
 0x17a   :  { %v881_v52 = vmul.f32 %v3118_v7, %v1883_v39  ;;  %v3120_v3 = vstv %s3107_s3  ;;  %s3121_s22 = sld [smem:[#allocation120_spill]]  ;;  %v865_v49 = vadd.f32 %v863_v37, %v859_v32  ;;  %v917_v54 = vmul.f32 %v3128_v61, %v1863_v53 }
 0x17b   :  { %v719_v5 = vmul.f32 %v3120_v3, %v715_v34  ;;  %v3122_v11 = vstv %s3109_s13  ;;  %s3123_s21 = sld [smem:[#allocation121_spill]]  ;;  %v3129_v15 = vstv %s1714_s1  ;;  %v825_v56 = vadd.f32 %v823_v19, %v819_v28 }
 0x17c   :  { %v887_v1 = vmul.f32 %v3122_v11, %v1887_v40  ;;  %v3124_v60 = vstv %s3111_s17  ;;  %s3125_s9 = sld [smem:[#allocation122_spill]]  ;;  %v921_v48 = vmul.f32 %v3129_v15, %v1867_v50  ;;  %v871_v21 = vadd.f32 %v869_v0, %v865_v49 }
 0x17d   :  { %v777_v59 = vadd.f32 %v3124_v60, %v773_v47  ;;  %v3126_v44 = vstv %s3113_s8  ;;  %s3127_s24 = sld [smem:[#allocation97_spill]]  ;;  %v721_v46 = vadd.f32 %v719_v5, %v657_v57  ;;  %v831_v4 = vadd.f32 %v829_v35, %v825_v56 }
 0x17e   :  { %v893_v13 = vmul.f32 %v3126_v44, %v1891_v41  ;;  %s3130_s7 = sld [smem:[#allocation109_spill]]  ;;  %v3132_v2 = vstv %s3115_s0  ;;  %v923_v38 = vadd.f32 %v921_v48, %v917_v54  ;;  %v877_v50 = vadd.f32 %v875_v27, %v871_v21 }
 0x17f   :  { %s3131_s3 = sld [smem:[#allocation14_spill]]  ;;  %v899_v37 = vmul.f32 %v3132_v2, %v1940_v36  ;;  %v779_v34 = vmax.f32 %v777_v59, 0.0  ;;  %v3135_v32 = vstv %s3119_s12  ;;  %v837_v60 = vadd.f32 %v835_v6, %v831_v4 }
 0x180   :  { %s3133_s13 = sld [smem:[#allocation15_spill]]  ;;  %v927_v47 = vmul.f32 %v3135_v32, %v1871_v63  ;;  %v3136_v53 = vstv %s3121_s22  ;;  %v883_v35 = vadd.f32 %v881_v52, %v877_v50 }
 0x181   :  { %s3134_s17 = sld [smem:[#allocation16_spill]]  ;;  %v933_v12 = vmul.f32 %v3136_v53, %v1875_v33  ;;  %v3138_v57 = vstv %s3123_s21 }
 0x182   :  { %s3137_s8 = sld [smem:[#allocation20_spill]]  ;;  %v939_v19 = vmul.f32 %v3138_v57, %v1879_v9  ;;  %v3140_v0 = vstv %s3125_s9  ;;  %v929_v28 = vadd.f32 %v927_v47, %v923_v38  ;;  %v889_v48 = vadd.f32 %v887_v1, %v883_v35 }
 0x183   :  { %s3139_s1 = sld [smem:[#allocation107_spill]]  ;;  %v945_v7 = vmul.f32 %v3140_v0, %v1883_v39  ;;  %v3141_v3 = vstv %s3127_s24  ;;  %v382_v0 = vmul.f32 %v381_v55, %v1823_v10 }
 0x184   :  { %v783_v5 = vmul.f32 %v3141_v3, %v779_v34  ;;  %v3142_v49 = vstv %s3130_s7  ;;  %s3144_s0 = sld [smem:[#allocation123_spill]]  ;;  %v935_v61 = vadd.f32 %v933_v12, %v929_v28  ;;  %v895_v1 = vadd.f32 %v893_v13, %v889_v48 }
 0x185   :  { %v951_v11 = vmul.f32 %v3142_v49, %v1887_v40  ;;  %v3143_v63 = vstv %s3131_s3  ;;  %s3145_s22 = sld [smem:[#allocation22_spill]]  ;;  %v384_v55 = vadd.f32 %v382_v0, %v1896_v45 }
 0x186   :  { %v284_v33 = vmul.f32 %v3143_v63, %v1823_v10  ;;  %v3146_v27 = vstv %s3133_s13  ;;  %s3148_s9 = sld [smem:[#allocation124_spill]]  ;;  %v785_v39 = vadd.f32 %v783_v5, %v721_v46  ;;  %v941_v46 = vadd.f32 %v939_v19, %v935_v61 }
 0x187   :  { %v298_v59 = vmul.f32 %v3146_v27, %v1823_v10  ;;  %v3147_v9 = vstv %s3134_s17  ;;  %s2183_s3 = sld [smem:[#allocation2 + $0x88]]  ;;  %v3170_v5 = vstv %s2981_s11 }
 0x188   :  { %v312_v44 = vmul.f32 %v3147_v9, %v1823_v10  ;;  %v286_v54 = vadd.f32 %v284_v33, %v1809_v51  ;;  %v3150_v40 = vstv %s3137_s8  ;;  %s3152_s7 = sld [smem:[#allocation24_spill]]  ;;  %v947_v12 = vadd.f32 %v945_v7, %v941_v46 }
 0x189   :  { %v326_v15 = vmul.f32 %v3150_v40, %v1823_v10  ;;  %v3151_v6 = vstv %s3139_s1  ;;  %s3153_s13 = sld [smem:[#allocation108_spill]]  ;;  %v300_v56 = vadd.f32 %v298_v59, %v1814_v14  ;;  %v396_v28 = vmul.f32 %v3170_v5, %v1823_v10 }
 0x18a   :  { %v841_v52 = vadd.f32 %v3151_v6, %v837_v60  ;;  %v314_v21 = vadd.f32 %v312_v44, %v1819_v24  ;;  %s3154_s17 = sld [smem:[#allocation26_spill]]  ;;  %v3155_v2 = vstv %s3144_s0  ;;  %v2201_v24 = vadd.f32 %v289_v42, %v286_v54 }
 0x18b   :  { %v957_v51 = vmul.f32 %v3155_v2, %v1891_v41  ;;  %v328_v34 = vadd.f32 %v326_v15, %v1828_v62  ;;  %v3157_v38 = vstv %s3145_s22  ;;  %s3158_s8 = sld [smem:[#allocation19_spill]]  ;;  %v2207_v41 = vadd.f32 %v303_v43, %v300_v56 }
 0x18c   :  { %v340_v32 = vmul.f32 %v3157_v38, %v1823_v10  ;;  %v843_v47 = vmax.f32 %v841_v52, 0.0  ;;  %v3159_v53 = vstv %s3148_s9  ;;  %s3160_s1 = sld [smem:[#allocation117_spill]]  ;;  %v953_v43 = vadd.f32 %v951_v11, %v947_v12 }
 0x18d   :  { %v963_v14 = vmul.f32 %v3159_v53, %v1940_v36  ;;  %s2203_s12 = sld [smem:[#allocation2 + $0x91]]  ;;  %v901_v36 = vadd.f32 %v899_v37, %v895_v1  ;;  %v967_v59 = vstv %s2183_s3  ;;  %v3183_v15 = vstv %s2984_s2 }
 0x18e   :  { %s3161_s22 = sld [smem:[#allocation21_spill]]  ;;  %v342_v62 = vadd.f32 %v340_v32, %v1833_v29  ;;  %v3162_v4 = vstv %s3152_s7  ;;  %v959_v11 = vadd.f32 %v957_v51, %v953_v43 }
 0x18f   :  { %v354_v50 = vmul.f32 %v3162_v4, %v1823_v10  ;;  %v3163_v13 = vstv %s3153_s13  ;;  %s3164_s0 = sld [smem:[#allocation32_spill]] }
 0x190   :  { %v847_v57 = vmul.f32 %v3163_v13, %v843_v47  ;;  %v3165_v42 = vstv %s3154_s17  ;;  %s3166_s21 = sld [smem:[#allocation33_spill]]  ;;  %v965_v45 = vadd.f32 %v963_v14, %v959_v11  ;;  %v3189_v47 = vstv %s2991_s16 }
 0x191   :  { %v368_v19 = vmul.f32 %v3165_v42, %v1823_v10  ;;  %v3167_v7 = vstv %s3158_s8  ;;  %s3168_s10 = sld [smem:[#allocation118_spill]]  ;;  %v356_v29 = vadd.f32 %v354_v50, %v1838_v30  ;;  %v398_v30 = vadd.f32 %v396_v28, %v1909_v20 }
 0x192   :  { %v2223_v3 = vadd.f32 %v3167_v7, %v314_v21  ;;  %s3169_s7 = sld [smem:[#allocation23_spill]]  ;;  %v849_v37 = vadd.f32 %v847_v57, %v785_v39  ;;  %v3171_v49 = vstv %s3160_s1  ;;  %v969_v48 = vadd.f32 %v967_v59, %v965_v45 }
 0x193   :  { %v905_v63 = vadd.f32 %v3171_v49, %v901_v36  ;;  %v370_v33 = vadd.f32 %v368_v19, %v1843_v31  ;;  %s3172_s24 = sld [smem:[#allocation25_spill]]  ;;  %v973_v52 = vstv %s2203_s12  ;;  %v472_v1 = vmul.f32 %v3189_v47, %v2207_v41 }
 0x194   :  { %s3173_s17 = sld [smem:[#allocation35_spill]]  ;;  %v3174_v60 = vstv %s3161_s22  ;;  %v416_v6 = vmul.f32 %v3183_v15, %v2223_v3  ;;  %v971_v53 = vmax.f32 %v969_v48, 0.0  ;;  %v3196_v42 = vstv %s2992_s25 }
 0x195   :  { %v2235_v35 = vadd.f32 %v3174_v60, %v328_v34  ;;  %v3175_v10 = vstv %s3164_s0  ;;  %s3176_s11 = sld [smem:[#allocation43_spill]]  ;;  %v907_v9 = vmax.f32 %v905_v63, 0.0  ;;  %v478_v19 = vmul.f32 %v3196_v42, %v2223_v3 }
 0x196   :  { %v406_v27 = vmul.f32 %v3175_v10, %v2201_v24  ;;  %v3177_v44 = vstv %s3166_s21  ;;  %s3178_s8 = sld [smem:[#allocation27_spill]]  ;;  %v975_v0 = vmul.f32 %v973_v52, %v971_v53  ;;  %v3202_v28 = vstv %s2997_s27 }
 0x197   :  { %v410_v31 = vmul.f32 %v3177_v44, %v2207_v41  ;;  %s3179_s9 = sld [smem:[#allocation29_spill]]  ;;  %v3180_v39 = vstv %s3168_s10  ;;  %v3205_v11 = vstv %s2998_s23  ;;  %v3222_v53 = vstv %s2903_s29 }
 0x198   :  { %v911_v61 = vmul.f32 %v3180_v39, %v907_v9  ;;  %v3181_v54 = vstv %s3169_s7  ;;  %s3182_s22 = sld [smem:[#allocation36_spill]]  ;;  %v536_v60 = vmul.f32 %v3205_v11, %v2207_v41 }
 0x199   :  { %v2249_v40 = vadd.f32 %v3181_v54, %v342_v62  ;;  %v412_v20 = vadd.f32 %v410_v31, %v406_v27  ;;  %s3184_s0 = sld [smem:[#allocation31_spill]]  ;;  %v3185_v56 = vstv %s3172_s24 }
 0x19a   :  { %s3186_s21 = sld [smem:[#allocation37_spill]]  ;;  %v2259_v21 = vadd.f32 %v3185_v56, %v356_v29  ;;  %v3187_v46 = vstv %s3173_s17  ;;  %v913_v51 = vadd.f32 %v911_v61, %v849_v37  ;;  %v532_v37 = vmul.f32 %v3202_v28, %v2201_v24 }
 0x19b   :  { %v422_v2 = vmul.f32 %v3187_v46, %v2235_v35  ;;  %v418_v34 = vadd.f32 %v416_v6, %v412_v20  ;;  %v3188_v38 = vstv %s3176_s11  ;;  %s3191_s2 = sld [smem:[#allocation38_spill]] }
 0x19c   :  { %v468_v32 = vmul.f32 %v3188_v38, %v2201_v24  ;;  %v3190_v14 = vstv %s3178_s8  ;;  %s3193_s7 = sld [smem:[#allocation39_spill]]  ;;  %v538_v54 = vadd.f32 %v536_v60, %v532_v37 }
 0x19d   :  { %v2272_v12 = vadd.f32 %v3190_v14, %v370_v33  ;;  %v3192_v62 = vstv %s3179_s9  ;;  %s3194_s24 = sld [smem:[#allocation47_spill]]  ;;  %v424_v50 = vadd.f32 %v422_v2, %v418_v34  ;;  %v3204_v33 = vstv %s2994_s28 }
 0x19e   :  { %v2276_v4 = vadd.f32 %v3192_v62, %v384_v55  ;;  %v3195_v13 = vstv %s3182_s22  ;;  %v474_v36 = vadd.f32 %v472_v1, %v468_v32  ;;  %s3197_s16 = sld [smem:[#allocation56_spill]]  ;;  %v484_v55 = vmul.f32 %v3204_v33, %v2235_v35 }
 0x19f   :  { %v428_v57 = vmul.f32 %v3195_v13, %v2249_v40  ;;  %v3198_v43 = vstv %s3184_s0  ;;  %s3199_s17 = sld [smem:[#allocation40_spill]]  ;;  %v3217_v2 = vstv %s3010_s6  ;;  %v600_v14 = vmul.f32 %v3222_v53, %v2207_v41 }
 0x1a0   :  { %v2288_v7 = vadd.f32 %v3198_v43, %v398_v30  ;;  %v3200_v29 = vstv %s3186_s21  ;;  %s3201_s9 = sld [smem:[#allocation48_spill]]  ;;  %v480_v63 = vadd.f32 %v478_v19, %v474_v36  ;;  %v2302_v30 = vadd.f32 %v975_v0, %v913_v51 }
 0x1a1   :  { %v434_v5 = vmul.f32 %v3200_v29, %v2259_v21  ;;  %s3203_s11 = sld [smem:[#allocation65_spill]]  ;;  %v430_v49 = vadd.f32 %v428_v57, %v424_v50  ;;  %v3206_v10 = vstv %s3191_s2  ;;  %v548_v51 = vmul.f32 %v3217_v2, %v2235_v35 }
 0x1a2   :  { %s3207_s25 = sld [smem:[#allocation49_spill]]  ;;  %v440_v27 = vmul.f32 %v3206_v10, %v2272_v12  ;;  %v3208_v9 = vstv %s3193_s7  ;;  %v486_v61 = vadd.f32 %v484_v55, %v480_v63 }
 0x1a3   :  { %s3209_s27 = sld [smem:[#allocation50_spill]]  ;;  %v446_v44 = vmul.f32 %v3208_v9, %v2276_v4  ;;  %v3210_v31 = vstv %s3194_s24  ;;  %v436_v39 = vadd.f32 %v434_v5, %v430_v49 }
 0x1a4   :  { %s3211_s8 = sld [smem:[#allocation58_spill]]  ;;  %v490_v45 = vmul.f32 %v3210_v31, %v2249_v40  ;;  %v3213_v20 = vstv %s3197_s16 }
 0x1a5   :  { %s3212_s28 = sld [smem:[#allocation67_spill]]  ;;  %v542_v15 = vmul.f32 %v3213_v20, %v2223_v3  ;;  %v3214_v6 = vstv %s3199_s17  ;;  %v442_v32 = vadd.f32 %v440_v27, %v436_v39 }
 0x1a6   :  { %v452_v48 = vmul.f32 %v3214_v6, %v2288_v7  ;;  %v3215_v56 = vstv %s3201_s9  ;;  %s3216_s23 = sld [smem:[#allocation51_spill]]  ;;  %v492_v47 = vadd.f32 %v490_v45, %v486_v61 }
 0x1a7   :  { %v496_v46 = vmul.f32 %v3215_v56, %v2259_v21  ;;  %s3218_s22 = sld [smem:[#allocation59_spill]]  ;;  %v3219_v34 = vstv %s3203_s11  ;;  %v544_v1 = vadd.f32 %v542_v15, %v538_v54  ;;  %v448_v43 = vadd.f32 %v446_v44, %v442_v32 }
 0x1a8   :  { %s3220_s0 = sld [smem:[#allocation60_spill]]  ;;  %v596_v38 = vmul.f32 %v3219_v34, %v2201_v24  ;;  %v3223_v62 = vstv %s3207_s25 }
 0x1a9   :  { %s3221_s21 = sld [smem:[#allocation68_spill]]  ;;  %v502_v50 = vmul.f32 %v3223_v62, %v2272_v12  ;;  %v3224_v13 = vstv %s3209_s27  ;;  %v498_v29 = vadd.f32 %v496_v46, %v492_v47  ;;  %v550_v5 = vadd.f32 %v548_v51, %v544_v1 }
 0x1aa   :  { %s3225_s2 = sld [smem:[#allocation61_spill]]  ;;  %v508_v57 = vmul.f32 %v3224_v13, %v2276_v4  ;;  %v3226_v36 = vstv %s3211_s8  ;;  %v602_v28 = vadd.f32 %v600_v14, %v596_v38  ;;  %v454_v27 = vadd.f32 %v452_v48, %v448_v43 }
 0x1ab   :  { %s3227_s6 = sld [smem:[#allocation69_spill]]  ;;  %v554_v42 = vmul.f32 %v3226_v36, %v2249_v40  ;;  %v3228_v19 = vstv %s3212_s28  ;;  %v504_v9 = vadd.f32 %v502_v50, %v498_v29 }
 0x1ac   :  { %s3229_s7 = sld [smem:[#allocation76_spill]]  ;;  %v606_v0 = vmul.f32 %v3228_v19, %v2223_v3  ;;  %v3232_v37 = vstv %s3216_s23 }
 0x1ad   :  { %s3230_s24 = sld [smem:[#allocation77_spill]]  ;;  %v514_v49 = vmul.f32 %v3232_v37, %v2288_v7  ;;  %v3233_v63 = vstv %s3218_s22  ;;  %v556_v44 = vadd.f32 %v554_v42, %v550_v5  ;;  %v510_v2 = vadd.f32 %v508_v57, %v504_v9 }
 0x1ae   :  { %s3231_s16 = sld [smem:[#allocation41_spill]]  ;;  %v560_v33 = vmul.f32 %v3233_v63, %v2259_v21  ;;  %v3235_v55 = vstv %s3220_s0  ;;  %v608_v31 = vadd.f32 %v606_v0, %v602_v28  ;;  %v724_v5 = vmul.f32 %v723_v25, %v2201_v24 }
 0x1af   :  { %s3234_s29 = sld [smem:[#allocation62_spill]]  ;;  %v566_v11 = vmul.f32 %v3235_v55, %v2272_v12  ;;  %v3237_v60 = vstv %s3221_s21  ;;  %v516_v13 = vadd.f32 %v514_v49, %v510_v2  ;;  %v728_v25 = vmul.f32 %v727_v16, %v2207_v41 }
 0x1b0   :  { %s3236_s17 = sld [smem:[#allocation70_spill]]  ;;  %v612_v10 = vmul.f32 %v3237_v60, %v2235_v35  ;;  %v3239_v45 = vstv %s3225_s2  ;;  %v562_v51 = vadd.f32 %v560_v33, %v556_v44  ;;  %v3265_v44 = vstv %s3069_s30 }
 0x1b1   :  { %s3238_s9 = sld [smem:[#allocation78_spill]]  ;;  %v572_v39 = vmul.f32 %v3239_v45, %v2276_v4  ;;  %v3240_v61 = vstv %s3227_s6  ;;  %v3271_v16 = vstv %s3070_s5 }
 0x1b2   :  { %s3241_s11 = sld [smem:[#allocation71_spill]]  ;;  %v618_v54 = vmul.f32 %v3240_v61, %v2249_v40  ;;  %v3242_v20 = vstv %s3229_s7  ;;  %v614_v34 = vadd.f32 %v612_v10, %v608_v31  ;;  %v568_v57 = vadd.f32 %v566_v11, %v562_v51 }
 0x1b3   :  { %v660_v15 = vmul.f32 %v3242_v20, %v2201_v24  ;;  %v3243_v6 = vstv %s3230_s24  ;;  %s3244_s25 = sld [smem:[#allocation79_spill]] }
 0x1b4   :  { %v664_v56 = vmul.f32 %v3243_v6, %v2207_v41  ;;  %v3245_v46 = vstv %s3231_s16  ;;  %s3247_s8 = sld [smem:[#allocation52_spill]]  ;;  %v620_v36 = vadd.f32 %v618_v54, %v614_v34  ;;  %v574_v63 = vadd.f32 %v572_v39, %v568_v57 }
 0x1b5   :  { %v458_v48 = vadd.f32 %v3245_v46, %v454_v27  ;;  %v3248_v38 = vstv %s3234_s29  ;;  %s3249_s28 = sld [smem:[#allocation72_spill]]  ;;  %v730_v6 = vadd.f32 %v728_v25, %v724_v5 }
 0x1b6   :  { %v578_v32 = vmul.f32 %v3248_v38, %v2288_v7  ;;  %v3250_v47 = vstv %s3236_s17  ;;  %s3251_s23 = sld [smem:[#allocation73_spill]]  ;;  %v666_v53 = vadd.f32 %v664_v56, %v660_v15 }
 0x1b7   :  { %v624_v1 = vmul.f32 %v3250_v47, %v2259_v21  ;;  %v3252_v14 = vstv %s3238_s9  ;;  %s3253_s22 = sld [smem:[#allocation80_spill]]  ;;  %v460_v50 = vmax.f32 %v458_v48, 0.0  ;;  %v3269_v48 = vstv %s3075_s20 }
 0x1b8   :  { %v670_v62 = vmul.f32 %v3252_v14, %v2223_v3  ;;  %v3255_v42 = vstv %s3241_s11  ;;  %s3257_s21 = sld [smem:[#allocation81_spill]]  ;;  %v580_v39 = vadd.f32 %v578_v32, %v574_v63 }
 0x1b9   :  { %v630_v19 = vmul.f32 %v3255_v42, %v2272_v12  ;;  %v3256_v43 = vstv %s3244_s25  ;;  %s3259_s2 = sld [smem:[#allocation89_spill]]  ;;  %v626_v49 = vadd.f32 %v624_v1, %v620_v36  ;;  %v464_v31 = vmul.f32 %v3265_v44, %v460_v50 }
 0x1ba   :  { %v672_v0 = vadd.f32 %v670_v62, %v666_v53  ;;  %v676_v29 = vmul.f32 %v3256_v43, %v2235_v35  ;;  %v3258_v28 = vstv %s3247_s8  ;;  %s3262_s6 = sld [smem:[#allocation82_spill]]  ;;  %v584_v51 = vadd.f32 %v3271_v16, %v580_v39 }
 0x1bb   :  { %v520_v37 = vadd.f32 %v3258_v28, %v516_v13  ;;  %v3260_v33 = vstv %s3249_s28  ;;  %s3264_s7 = sld [smem:[#allocation90_spill]]  ;;  %v632_v61 = vadd.f32 %v630_v19, %v626_v49  ;;  %v788_v62 = vmul.f32 %v787_v22, %v2201_v24 }
 0x1bc   :  { %v636_v55 = vmul.f32 %v3260_v33, %v2276_v4  ;;  %v3261_v11 = vstv %s3251_s23  ;;  %v678_v10 = vadd.f32 %v676_v29, %v672_v0  ;;  %s3267_s24 = sld [smem:[#allocation83_spill]]  ;;  %v586_v13 = vmax.f32 %v584_v51, 0.0 }
 0x1bd   :  { %v642_v60 = vmul.f32 %v3261_v11, %v2288_v7  ;;  %v3263_v27 = vstv %s3253_s22  ;;  %v522_v45 = vmax.f32 %v520_v37, 0.0  ;;  %s3272_s30 = sld [smem:[#allocation64_spill]]  ;;  %v792_v36 = vmul.f32 %v791_v18, %v2207_v41 }
 0x1be   :  { %v682_v9 = vmul.f32 %v3263_v27, %v2249_v40  ;;  %v3266_v20 = vstv %s3257_s21  ;;  %s3273_s29 = sld [smem:[#allocation74_spill]]  ;;  %v638_v34 = vadd.f32 %v636_v55, %v632_v61  ;;  %v746_v29 = vmul.f32 %v745_v23, %v2249_v40 }
 0x1bf   :  { %v688_v15 = vmul.f32 %v3266_v20, %v2259_v21  ;;  %v3268_v56 = vstv %s3259_s2  ;;  %v526_v2 = vmul.f32 %v3269_v48, %v522_v45  ;;  %s3275_s17 = sld [smem:[#allocation100_spill]]  ;;  %v794_v63 = vadd.f32 %v792_v36, %v788_v62 }
 0x1c0   :  { %v684_v54 = vadd.f32 %v682_v9, %v678_v10  ;;  %v734_v46 = vmul.f32 %v3268_v56, %v2223_v3  ;;  %v3274_v38 = vstv %s3262_s6  ;;  %s3277_s9 = sld [smem:[#allocation84_spill]]  ;;  %v644_v57 = vadd.f32 %v642_v60, %v638_v34 }
 0x1c1   :  { %v694_v32 = vmul.f32 %v3274_v38, %v2272_v12  ;;  %v3276_v53 = vstv %s3264_s7  ;;  %v528_v50 = vadd.f32 %v526_v2, %v464_v31  ;;  %s3279_s5 = sld [smem:[#allocation101_spill]]  ;;  %v752_v23 = vmul.f32 %v751_v58, %v2259_v21 }
 0x1c2   :  { %v690_v47 = vadd.f32 %v688_v15, %v684_v54  ;;  %v736_v1 = vadd.f32 %v734_v46, %v730_v6  ;;  %v740_v14 = vmul.f32 %v3276_v53, %v2235_v35  ;;  %v3280_v19 = vstv %s3267_s24  ;;  %s3281_s11 = sld [smem:[#allocation93_spill]] }
 0x1c3   :  { %v700_v0 = vmul.f32 %v3280_v19, %v2276_v4  ;;  %v3282_v5 = vstv %s3272_s30  ;;  %s3285_s18 = sld [smem:[#allocation102_spill]]  ;;  %v852_v54 = vmul.f32 %v851_v17, %v2201_v24  ;;  %v3295_v20 = vstv %s3094_s14 }
 0x1c4   :  { %v696_v42 = vadd.f32 %v694_v32, %v690_v47  ;;  %v742_v43 = vadd.f32 %v740_v14, %v736_v1  ;;  %v590_v22 = vmul.f32 %v3282_v5, %v586_v13  ;;  %v3283_v28 = vstv %s3273_s29  ;;  %s3286_s4 = sld [smem:[#allocation110_spill]] }
 0x1c5   :  { %v648_v37 = vadd.f32 %v3283_v28, %v644_v57  ;;  %v3284_v49 = vstv %s3275_s17  ;;  %s3288_s25 = sld [smem:[#allocation85_spill]]  ;;  %v816_v17 = vmul.f32 %v815_v26, %v2259_v21  ;;  %v822_v36 = vmul.f32 %v821_v8, %v2272_v12 }
 0x1c6   :  { %v798_v18 = vmul.f32 %v3284_v49, %v2223_v3  ;;  %v702_v33 = vadd.f32 %v700_v0, %v696_v42  ;;  %v3287_v55 = vstv %s3277_s9  ;;  %v748_v60 = vadd.f32 %v746_v29, %v742_v43  ;;  %s3289_s27 = sld [smem:[#allocation94_spill]] }
 0x1c7   :  { %v706_v11 = vmul.f32 %v3287_v55, %v2288_v7  ;;  %v592_v10 = vadd.f32 %v590_v22, %v528_v50  ;;  %v650_v27 = vmax.f32 %v648_v37, 0.0  ;;  %v3291_v25 = vstv %s3279_s5  ;;  %s3292_s28 = sld [smem:[#allocation111_spill]] }
 0x1c8   :  { %v800_v9 = vadd.f32 %v798_v18, %v794_v63  ;;  %v804_v44 = vmul.f32 %v3291_v25, %v2235_v35  ;;  %v754_v45 = vadd.f32 %v752_v23, %v748_v60  ;;  %v3293_v39 = vstv %s3281_s11  ;;  %s3294_s23 = sld [smem:[#allocation95_spill]] }
 0x1c9   :  { %v708_v31 = vadd.f32 %v706_v11, %v702_v33  ;;  %v758_v61 = vmul.f32 %v3293_v39, %v2272_v12  ;;  %v654_v58 = vmul.f32 %v3295_v20, %v650_v27  ;;  %v3297_v6 = vstv %s3285_s18  ;;  %s3300_s0 = sld [smem:[#allocation86_spill]] }
 0x1ca   :  { %v806_v15 = vadd.f32 %v804_v44, %v800_v9  ;;  %v810_v56 = vmul.f32 %v3297_v6, %v2249_v40  ;;  %v3298_v46 = vstv %s3286_s4  ;;  %s3302_s14 = sld [smem:[#allocation119_spill]]  ;;  %v3310_v19 = vstv %s3102_s26 }
 0x1cb   :  { %v856_v48 = vmul.f32 %v3298_v46, %v2207_v41  ;;  %v3299_v2 = vstv %s3288_s25  ;;  %v760_v51 = vadd.f32 %v758_v61, %v754_v45  ;;  %v656_v32 = vadd.f32 %v654_v58, %v592_v10  ;;  %s3303_s19 = sld [smem:[#allocation105_spill]] }
 0x1cc   :  { %v712_v16 = vadd.f32 %v3299_v2, %v708_v31  ;;  %v3301_v34 = vstv %s3289_s27  ;;  %v812_v47 = vadd.f32 %v810_v56, %v806_v15  ;;  %s3305_s21 = sld [smem:[#allocation112_spill]]  ;;  %v868_v0 = vmul.f32 %v3310_v19, %v2235_v35 }
 0x1cd   :  { %v764_v38 = vmul.f32 %v3301_v34, %v2276_v4  ;;  %v858_v1 = vadd.f32 %v856_v48, %v852_v54  ;;  %v3304_v53 = vstv %s3292_s28  ;;  %s3306_s2 = sld [smem:[#allocation96_spill]]  ;;  %v3311_v43 = vstv %s1708_s15 }
 0x1ce   :  { %v862_v14 = vmul.f32 %v3304_v53, %v2223_v3  ;;  %v714_v62 = vmax.f32 %v712_v16, 0.0  ;;  %v3307_v13 = vstv %s3294_s23  ;;  %s3308_s6 = sld [smem:[#allocation98_spill]]  ;;  %v818_v42 = vadd.f32 %v816_v17, %v812_v47 }
 0x1cf   :  { %v766_v50 = vadd.f32 %v764_v38, %v760_v51  ;;  %v770_v57 = vmul.f32 %v3307_v13, %v2288_v7  ;;  %s3309_s7 = sld [smem:[#allocation106_spill]]  ;;  %v916_v29 = vmul.f32 %v3311_v43, %v2201_v24  ;;  %v3313_v5 = vstv %s3300_s0 }
 0x1d0   :  { %v864_v26 = vadd.f32 %v862_v14, %v858_v1  ;;  %s3312_s24 = sld [smem:[#allocation113_spill]]  ;;  %v718_v22 = vmul.f32 %v3313_v5, %v714_v62  ;;  %v3314_v37 = vstv %s3302_s14  ;;  %v824_v49 = vadd.f32 %v822_v36, %v818_v42 }
 0x1d1   :  { %v772_v28 = vadd.f32 %v770_v57, %v766_v50  ;;  %s3315_s16 = sld [smem:[#allocation120_spill]]  ;;  %v920_v63 = vmul.f32 %v3314_v37, %v2207_v41  ;;  %v3316_v8 = vstv %s3303_s19 }
 0x1d2   :  { %v828_v18 = vmul.f32 %v3316_v8, %v2276_v4  ;;  %s3317_s30 = sld [smem:[#allocation114_spill]]  ;;  %v870_v33 = vadd.f32 %v868_v0, %v864_v26  ;;  %v3318_v55 = vstv %s3305_s21  ;;  %v720_v60 = vadd.f32 %v718_v22, %v656_v32 }
 0x1d3   :  { %s3319_s26 = sld [smem:[#allocation97_spill]]  ;;  %v874_v11 = vmul.f32 %v3318_v55, %v2249_v40  ;;  %v3320_v23 = vstv %s3306_s2  ;;  %v922_v10 = vadd.f32 %v920_v63, %v916_v29  ;;  %v3341_v26 = vstv %s3153_s13 }
 0x1d4   :  { %s3321_s15 = sld [smem:[#allocation121_spill]]  ;;  %v776_v24 = vadd.f32 %v3320_v23, %v772_v28  ;;  %v3323_v27 = vstv %s3308_s6  ;;  %v830_v41 = vadd.f32 %v828_v18, %v824_v49  ;;  %v3343_v22 = vstv %s3160_s1 }
 0x1d5   :  { %s3322_s29 = sld [smem:[#allocation107_spill]]  ;;  %v926_v9 = vmul.f32 %v3323_v27, %v2223_v3  ;;  %v3325_v25 = vstv %s3309_s7  ;;  %v876_v31 = vadd.f32 %v874_v11, %v870_v33  ;;  %v3345_v33 = vstv %s3168_s10 }
 0x1d6   :  { %s3324_s17 = sld [smem:[#allocation115_spill]]  ;;  %v834_v44 = vmul.f32 %v3325_v25, %v2288_v7  ;;  %v3326_v45 = vstv %s3312_s24  ;;  %v778_v61 = vmax.f32 %v776_v24, 0.0 }
 0x1d7   :  { %s3327_s9 = sld [smem:[#allocation122_spill]]  ;;  %v880_v39 = vmul.f32 %v3326_v45, %v2259_v21  ;;  %v928_v54 = vadd.f32 %v926_v9, %v922_v10  ;;  %v3328_v20 = vstv %s3315_s16 }
 0x1d8   :  { %s3329_s20 = sld [smem:[#allocation116_spill]]  ;;  %v932_v58 = vmul.f32 %v3328_v20, %v2235_v35  ;;  %v836_v15 = vadd.f32 %v834_v44, %v830_v41  ;;  %v3331_v3 = vstv %s3317_s30 }
 0x1d9   :  { %s3330_s5 = sld [smem:[#allocation109_spill]]  ;;  %v882_v6 = vadd.f32 %v880_v39, %v876_v31  ;;  %v886_v56 = vmul.f32 %v3331_v3, %v2272_v12  ;;  %v3332_v46 = vstv %s3319_s26 }
 0x1da   :  { %v782_v48 = vmul.f32 %v3332_v46, %v778_v61  ;;  %v934_v2 = vadd.f32 %v932_v58, %v928_v54  ;;  %v3333_v16 = vstv %s3321_s15  ;;  %s3335_s11 = sld [smem:[#allocation123_spill]] }
 0x1db   :  { %v938_v51 = vmul.f32 %v3333_v16, %v2249_v40  ;;  %v3334_v34 = vstv %s3322_s29  ;;  %v888_v17 = vadd.f32 %v886_v56, %v882_v6  ;;  %s3337_s18 = sld [smem:[#allocation124_spill]] }
 0x1dc   :  { %v840_v38 = vadd.f32 %v3334_v34, %v836_v15  ;;  %v3336_v32 = vstv %s3324_s17  ;;  %v784_v47 = vadd.f32 %v782_v48, %v720_v60  ;;  %s1143_s4 = sld [smem:[#allocation2 + $0x92]] }
 0x1dd   :  { %v892_v35 = vmul.f32 %v3336_v32, %v2276_v4  ;;  %v940_v1 = vadd.f32 %v938_v51, %v934_v2  ;;  %v3338_v53 = vstv %s3327_s9  ;;  %s3346_s13 = sld [smem:[#allocation125_spill]] }
 0x1de   :  { %v944_v14 = vmul.f32 %v3338_v53, %v2259_v21  ;;  %v842_v62 = vmax.f32 %v840_v38, 0.0  ;;  %v3339_v13 = vstv %s3329_s20 }
 0x1df   :  { %v894_v50 = vadd.f32 %v892_v35, %v888_v17  ;;  %v898_v40 = vmul.f32 %v3339_v13, %v2288_v7  ;;  %v3340_v36 = vstv %s3330_s5 }
 0x1e0   :  { %v946_v57 = vadd.f32 %v944_v14, %v940_v1  ;;  %v950_v42 = vmul.f32 %v3340_v36, %v2272_v12  ;;  %v846_v19 = vmul.f32 %v3341_v26, %v842_v62  ;;  %v3342_v29 = vstv %s3335_s11 }
 0x1e1   :  { %v900_v0 = vadd.f32 %v898_v40, %v894_v50  ;;  %v956_v21 = vmul.f32 %v3342_v29, %v2276_v4  ;;  %v3344_v63 = vstv %s3337_s18 }
 0x1e2   :  { %v952_v43 = vadd.f32 %v950_v42, %v946_v57  ;;  %v848_v5 = vadd.f32 %v846_v19, %v784_v47  ;;  %v962_v49 = vmul.f32 %v3344_v63, %v2288_v7  ;;  %v979_v11 = vstv %s1143_s4 }
 0x1e3   :  { %v904_v28 = vadd.f32 %v3343_v22, %v900_v0  ;;  %v981_v24 = vadd.f32 %v979_v11, %v2302_v30 }
 0x1e4   :  { %v958_v37 = vadd.f32 %v956_v21, %v952_v43 }
 0x1e5   :  { %v906_v8 = vmax.f32 %v904_v28, 0.0  ;;  %v983_v27 = vmax.f32 %v981_v24, 0.0 }
 0x1e6   :  { %v964_v18 = vadd.f32 %v962_v49, %v958_v37 }
 0x1e7   :  { %v910_v12 = vmul.f32 %v3345_v33, %v906_v8 }
 0x1e8   :  { %v968_v55 = vadd.f32 %v967_v59, %v964_v18 }
 0x1e9   :  { %v912_v60 = vadd.f32 %v910_v12, %v848_v5 }
 0x1ea   :  { %v970_v23 = vmax.f32 %v968_v55, 0.0 }
 0x1ec   :  { %v974_v4 = vmul.f32 %v973_v52, %v970_v23 }
 0x1ee   :  { %v976_v10 = vadd.f32 %v974_v4, %v912_v60 }
 0x1f0   :  { %v980_v9 = vadd.f32 %v979_v11, %v976_v10 }
 0x1f2   :  { %v982_v41 = vmax.f32 %v980_v9, 0.0 }
 0x1f4   :  { %v984_v25 = vmul.f32 %v983_v27, %v982_v41 }
 0x1f6   :  { %v1144_v44 = vmul.f32 -1.442695, %v984_v25 }
 0x1f8   :  { %1148 = vpow2.f32 %v1144_v44 }
 0x205   :  { %v1149_v7 = vpop.eup %1148 }
 0x206   :  { %v988_v31 = vadd.f32 1.0, %v1149_v7 }
 0x208   :  { %1150 = vrcp.f32 %v988_v31 }
 0x215   :  { %v1151_v45 = vpop.eup %1150 }
 0x216   :  { %992 = vst.msk [vmem:[%s3346_s13] sm:$0xf] %vm991_vm1, %v1151_v45 }
 0x217   :  { %997 = vsyncpa [#allocation3], 1 }

</bundles_post_ra>
